<compile_context>
chip_gen: v5e
topology: v5e:2x2
jax: 0.10.0
libtpu: 0.0.40
codegen_flags: <defaults>
</compile_context>

<pallas_src>
from typing import NamedTuple, Tuple

import jax
import jax.numpy as jnp
from jax.experimental import pallas as pl
from jax.experimental.pallas import tpu as pltpu

LANE = 128
SUBLANE = 8

_LAYER_NAMES = ("enc_1", "enc_2", "enc_3", "z_layer",
                "dec_1", "dec_2", "dec_3", "x_bar_layer")


def _round_up(x, m):
    return ((x + m - 1) // m) * m


def _cdiv(a, b):
    return (a + b - 1) // b


class AEMeta(NamedTuple):
    dims_in: Tuple[int, ...]
    dims_out: Tuple[int, ...]
    pin: Tuple[int, ...]
    pout: Tuple[int, ...]


def prepare_ae_params(params, compute_dtype=jnp.bfloat16):
    """Zero-pad every layer's (W, b) to lane multiples ONCE and cast W to bf16.

    Zero padding keeps the math exact (padded rows/cols contribute 0).  Doing
    this outside the jitted forward removes the per-step pad/copy HBM traffic.
    """
    dims_in = tuple(params[n][0].shape[0] for n in _LAYER_NAMES)
    dims_out = tuple(params[n][0].shape[1] for n in _LAYER_NAMES)
    pin = tuple(_round_up(d, LANE) for d in dims_in)
    pout = tuple(_round_up(d, LANE) for d in dims_out)

    flat = []
    for i, name in enumerate(_LAYER_NAMES):
        w, b = params[name]
        wp = jnp.pad(w, ((0, pin[i] - w.shape[0]), (0, pout[i] - w.shape[1])))
        bp = jnp.pad(b, (0, pout[i] - b.shape[0])).reshape(1, pout[i])
        flat.append(wp.astype(compute_dtype))   # bf16 weights: MXU-native, half HBM/VMEM
        flat.append(bp.astype(jnp.float32))     # biases stay f32 (added to f32 accumulator)
    return tuple(flat), AEMeta(dims_in, dims_out, pin, pout)


def _ae_fused_kernel(x_ref,
                     w1, b1, w2, b2, w3, b3, wz, bz,
                     wd1, bd1, wd2, bd2, wd3, bd3, wo, bo,
                     xbar_ref, e1_ref, e2_ref, e3_ref, z_ref):
    """Whole AE forward for one batch-row tile; activations never leave VMEM."""

    def lin(h, w_ref, b_ref, relu):
        # bf16 operands into the MXU, f32 accumulation, f32 bias add.
        y = jnp.dot(h.astype(w_ref.dtype), w_ref[...],
                    preferred_element_type=jnp.float32)
        y = y + b_ref[...]                       # (1, Dout) broadcasts over rows
        if relu:
            y = jnp.maximum(y, 0.0)
        return y

    x = x_ref[...].astype(jnp.float32)
    e1 = lin(x,  w1, b1, True)
    e1_ref[...] = e1.astype(e1_ref.dtype)
    e2 = lin(e1, w2, b2, True)
    e2_ref[...] = e2.astype(e2_ref.dtype)
    e3 = lin(e2, w3, b3, True)
    e3_ref[...] = e3.astype(e3_ref.dtype)
    z = lin(e3, wz, bz, False)
    z_ref[...] = z.astype(z_ref.dtype)
    d1 = lin(z,  wd1, bd1, True)
    d2 = lin(d1, wd2, bd2, True)
    d3 = lin(d2, wd3, bd3, True)
    xb = lin(d3, wo, bo, False)
    xbar_ref[...] = xb.astype(xbar_ref.dtype)


def ae_forward(flat_params, x, *, meta: AEMeta, tm_max: int = 256,
               weight_buffers: int = 1):
    """Fused AE forward. Returns (x_bar, enc_h1, enc_h2, enc_h3, z)."""
    batch, n_input = x.shape
    out_dtype = x.dtype
    pin, pout, dims_out = meta.pin, meta.pout, meta.dims_out
    assert n_input == meta.dims_in[0]

    x_itemsize = jnp.dtype(out_dtype).itemsize
    w_itemsize = jnp.dtype(flat_params[0].dtype).itemsize

    # ---- batch tiling: >=2 tiles when batch allows (2 TCs on v7x), minimal
    # ragged padding (tm = round_up(ceil(batch / n_tiles), 8)).
    tm_max = max(SUBLANE, _round_up(min(int(tm_max), 1024), SUBLANE))
    min_tiles = 2 if batch >= 2 * SUBLANE else 1
    n_tiles = max(_cdiv(batch, tm_max), min_tiles)
    tm = _round_up(_cdiv(batch, n_tiles), SUBLANE)
    batch_p = n_tiles * tm
    grid = (n_tiles,)

    # Zero-pad input rows / lanes (cheap, per-call; weights already padded).
    xp = jnp.pad(x, ((0, batch_p - batch), (0, pin[0] - n_input)))

    # Weights/biases: constant index map -> VMEM-resident; single-buffered.
    wmode = pl.Buffered(weight_buffers) if weight_buffers is not None else None
    in_specs = [pl.BlockSpec((tm, pin[0]), lambda g: (g, 0))]
    for i in range(8):
        in_specs.append(pl.BlockSpec((pin[i], pout[i]), lambda g: (0, 0),
                                     pipeline_mode=wmode))
        in_specs.append(pl.BlockSpec((1, pout[i]), lambda g: (0, 0),
                                     pipeline_mode=wmode))

    out_dims = (pout[7], pout[0], pout[1], pout[2], pout[3])   # xbar, e1, e2, e3, z
    out_specs = tuple(pl.BlockSpec((tm, d), lambda g: (g, 0)) for d in out_dims)
    out_shape = tuple(jax.ShapeDtypeStruct((batch_p, d), out_dtype) for d in out_dims)

    # ---- explicit VMEM budget: weights (x1 or x2 buffers), I/O tiles (x2
    # double-buffered), internal f32 activations + bf16 MXU copies, headroom.
    n_wbuf = weight_buffers if weight_buffers is not None else 2
    w_bytes = sum(pin[i] * pout[i] * w_itemsize + pout[i] * 4 for i in range(8))
    io_bytes = 2 * tm * pin[0] * x_itemsize + 2 * tm * sum(out_dims) * x_itemsize
    act_bytes = tm * (pin[0] + sum(pout)) * (4 + w_itemsize)
    vmem_limit = n_wbuf * w_bytes + io_bytes + act_bytes + (8 << 20)
    vmem_limit = int(min(max(vmem_limit, 32 << 20), 128 << 20))
    # NOTE: for real SDCN dims on v7x (64 MiB VMEM), shrink tm_max if this
    # budget approaches the physical limit.

    flops = 2 * batch_p * sum(pin[i] * pout[i] for i in range(8))
    bytes_accessed = (batch_p * pin[0] * x_itemsize
                      + sum(pin[i] * pout[i] * w_itemsize + pout[i] * 4
                            for i in range(8))
                      + batch_p * sum(out_dims) * x_itemsize)
    cost = pl.CostEstimate(flops=flops, transcendentals=0,
                           bytes_accessed=bytes_accessed)

    outs = pl.pallas_call(
        _ae_fused_kernel,
        out_shape=out_shape,
        grid=grid,
        in_specs=in_specs,
        out_specs=out_specs,
        compiler_params=pltpu.CompilerParams(
            dimension_semantics=("parallel",),
            vmem_limit_bytes=vmem_limit),
        cost_estimate=cost,
    )(xp, *flat_params)

    x_bar_p, e1_p, e2_p, e3_p, z_p = outs
    x_bar = x_bar_p[:batch, :dims_out[7]]
    enc_h1 = e1_p[:batch, :dims_out[0]]
    enc_h2 = e2_p[:batch, :dims_out[1]]
    enc_h3 = e3_p[:batch, :dims_out[2]]
    z = z_p[:batch, :dims_out[3]]
    return x_bar, enc_h1, enc_h2, enc_h3, z


def init_linear_params(key, n_in, n_out, dtype=jnp.float32):
    """nn.Linear-style uniform(-1/sqrt(n_in), 1/sqrt(n_in)); W stored (n_in, n_out)."""
    kw, kb = jax.random.split(key)
    bound = 1.0 / jnp.sqrt(jnp.asarray(n_in, dtype))
    w = jax.random.uniform(kw, (n_in, n_out), dtype, minval=-bound, maxval=bound)
    b = jax.random.uniform(kb, (n_out,), dtype, minval=-bound, maxval=bound)
    return w, b


def make_ae_params(key, n_enc_1, n_enc_2, n_enc_3, n_dec_1, n_dec_2, n_dec_3,
                   n_input, n_z):
    dims = [
        ("enc_1", n_input, n_enc_1),
        ("enc_2", n_enc_1, n_enc_2),
        ("enc_3", n_enc_2, n_enc_3),
        ("z_layer", n_enc_3, n_z),
        ("dec_1", n_z, n_dec_1),
        ("dec_2", n_dec_1, n_dec_2),
        ("dec_3", n_dec_2, n_dec_3),
        ("x_bar_layer", n_dec_3, n_input),
    ]
    keys = jax.random.split(key, len(dims))
    params = {}
    for k, (name, din, dout) in zip(keys, dims):
        params[name] = init_linear_params(k, din, dout)
    return params


if __name__ == "__main__":
    # Small, deterministic configuration.  batch=20 (>= 2*SUBLANE) exercises the
    # two-tile grid path (v7x megacore split) plus the ragged-batch padding.
    n_input, n_z = 32, 16
    n_enc_1, n_enc_2, n_enc_3 = 64, 48, 32
    n_dec_1, n_dec_2, n_dec_3 = 32, 48, 64
    batch = 20

    key = jax.random.PRNGKey(0)
    k_params, k_x = jax.random.split(key)
    params = make_ae_params(k_params, n_enc_1, n_enc_2, n_enc_3,
                            n_dec_1, n_dec_2, n_dec_3, n_input, n_z)
    x = jax.random.normal(k_x, (batch, n_input), jnp.float32)

    # Pad + cast the parameters ONCE (not inside the per-step forward).
    flat_params, meta = prepare_ae_params(params, compute_dtype=jnp.bfloat16)

    fwd = jax.jit(ae_forward, static_argnames=("meta", "tm_max", "weight_buffers"))
    try:
        outs = jax.block_until_ready(fwd(flat_params, x, meta=meta))
    except Exception:
        # Fallback for Pallas builds that reject single-buffered weight blocks.
        outs = jax.block_until_ready(fwd(flat_params, x, meta=meta,
                                         weight_buffers=None))

    # Plain-JAX reference with the SAME dtype strategy (bf16 MXU operands,
    # f32 accumulation, f32 bias) -> tight correctness check of the kernel.
    def ref_forward(params, x, compute_dtype=jnp.bfloat16):
        def lin(h, name, relu):
            w, b = params[name]
            y = jnp.dot(h.astype(compute_dtype), w.astype(compute_dtype),
                        preferred_element_type=jnp.float32) + b.astype(jnp.float32)
            return jnp.maximum(y, 0.0) if relu else y
        e1 = lin(x, "enc_1", True)
        e2 = lin(e1, "enc_2", True)
        e3 = lin(e2, "enc_3", True)
        z = lin(e3, "z_layer", False)
        d1 = lin(z, "dec_1", True)
        d2 = lin(d1, "dec_2", True)
        d3 = lin(d2, "dec_3", True)
        xb = lin(d3, "x_bar_layer", False)
        return xb, e1, e2, e3, z

    refs = ref_forward(params, x)
    for got, want in zip(outs, refs):
        assert got.shape == want.shape and got.dtype == want.dtype
        assert jnp.allclose(got, want, atol=2e-2, rtol=2e-2), \
            float(jnp.max(jnp.abs(got - want)))

    print("KERNEL_OK")
</pallas_src>

<mosaic_0001>
module attributes {stable_mosaic.version = 11 : i64} {
  func.func @_ae_fused_kernel(%arg0: i32, %arg1: memref<16x128xf32, #tpu.memory_space<vmem>>, %arg2: memref<128x128xbf16, #tpu.memory_space<vmem>>, %arg3: memref<1x128xf32, #tpu.memory_space<vmem>>, %arg4: memref<128x128xbf16, #tpu.memory_space<vmem>>, %arg5: memref<1x128xf32, #tpu.memory_space<vmem>>, %arg6: memref<128x128xbf16, #tpu.memory_space<vmem>>, %arg7: memref<1x128xf32, #tpu.memory_space<vmem>>, %arg8: memref<128x128xbf16, #tpu.memory_space<vmem>>, %arg9: memref<1x128xf32, #tpu.memory_space<vmem>>, %arg10: memref<128x128xbf16, #tpu.memory_space<vmem>>, %arg11: memref<1x128xf32, #tpu.memory_space<vmem>>, %arg12: memref<128x128xbf16, #tpu.memory_space<vmem>>, %arg13: memref<1x128xf32, #tpu.memory_space<vmem>>, %arg14: memref<128x128xbf16, #tpu.memory_space<vmem>>, %arg15: memref<1x128xf32, #tpu.memory_space<vmem>>, %arg16: memref<128x128xbf16, #tpu.memory_space<vmem>>, %arg17: memref<1x128xf32, #tpu.memory_space<vmem>>, %arg18: memref<16x128xf32, #tpu.memory_space<vmem>>, %arg19: memref<16x128xf32, #tpu.memory_space<vmem>>, %arg20: memref<16x128xf32, #tpu.memory_space<vmem>>, %arg21: memref<16x128xf32, #tpu.memory_space<vmem>>, %arg22: memref<16x128xf32, #tpu.memory_space<vmem>>) attributes {dimension_semantics = [#tpu.dimension_semantics<parallel>], iteration_bounds = array<i64: 2>, scalar_prefetch = 0 : i64, scratch_operands = 0 : i64, tpu.core_type = #tpu.core_type<tc>, window_params = [{transform_indices = @transform_0, window_bounds = array<i64: 16, 128>}, {pipeline_mode = #tpu.pipeline_mode<synchronous>, transform_indices = @transform_1, window_bounds = array<i64: 128, 128>}, {pipeline_mode = #tpu.pipeline_mode<synchronous>, transform_indices = @transform_2, window_bounds = array<i64: 1, 128>}, {pipeline_mode = #tpu.pipeline_mode<synchronous>, transform_indices = @transform_3, window_bounds = array<i64: 128, 128>}, {pipeline_mode = #tpu.pipeline_mode<synchronous>, transform_indices = @transform_4, window_bounds = array<i64: 1, 128>}, {pipeline_mode = #tpu.pipeline_mode<synchronous>, transform_indices = @transform_5, window_bounds = array<i64: 128, 128>}, {pipeline_mode = #tpu.pipeline_mode<synchronous>, transform_indices = @transform_6, window_bounds = array<i64: 1, 128>}, {pipeline_mode = #tpu.pipeline_mode<synchronous>, transform_indices = @transform_7, window_bounds = array<i64: 128, 128>}, {pipeline_mode = #tpu.pipeline_mode<synchronous>, transform_indices = @transform_8, window_bounds = array<i64: 1, 128>}, {pipeline_mode = #tpu.pipeline_mode<synchronous>, transform_indices = @transform_9, window_bounds = array<i64: 128, 128>}, {pipeline_mode = #tpu.pipeline_mode<synchronous>, transform_indices = @transform_10, window_bounds = array<i64: 1, 128>}, {pipeline_mode = #tpu.pipeline_mode<synchronous>, transform_indices = @transform_11, window_bounds = array<i64: 128, 128>}, {pipeline_mode = #tpu.pipeline_mode<synchronous>, transform_indices = @transform_12, window_bounds = array<i64: 1, 128>}, {pipeline_mode = #tpu.pipeline_mode<synchronous>, transform_indices = @transform_13, window_bounds = array<i64: 128, 128>}, {pipeline_mode = #tpu.pipeline_mode<synchronous>, transform_indices = @transform_14, window_bounds = array<i64: 1, 128>}, {pipeline_mode = #tpu.pipeline_mode<synchronous>, transform_indices = @transform_15, window_bounds = array<i64: 128, 128>}, {pipeline_mode = #tpu.pipeline_mode<synchronous>, transform_indices = @transform_16, window_bounds = array<i64: 1, 128>}, {transform_indices = @transform_17, window_bounds = array<i64: 16, 128>}, {transform_indices = @transform_18, window_bounds = array<i64: 16, 128>}, {transform_indices = @transform_19, window_bounds = array<i64: 16, 128>}, {transform_indices = @transform_20, window_bounds = array<i64: 16, 128>}, {transform_indices = @transform_21, window_bounds = array<i64: 16, 128>}]} {
    %c0 = arith.constant 0 : index
    %c0_0 = arith.constant 0 : index
    %0 = vector.load %arg1[%c0, %c0_0] : memref<16x128xf32, #tpu.memory_space<vmem>>, vector<16x128xf32>
    %1 = arith.truncf %0 : vector<16x128xf32> to vector<16x128xbf16>
    %c0_1 = arith.constant 0 : index
    %c0_2 = arith.constant 0 : index
    %2 = vector.load %arg2[%c0_1, %c0_2] : memref<128x128xbf16, #tpu.memory_space<vmem>>, vector<128x128xbf16>
    %cst = arith.constant dense<0.000000e+00> : vector<16x128xf32>
    %3 = tpu.matmul %1, %2, %cst {dimension_numbers = #tpu.dot_dimension_numbers<[1], [0], [0], [1], [0, 0, 1, 1], [], []>} : vector<16x128xbf16>, vector<128x128xbf16>, vector<16x128xf32> -> vector<16x128xf32>
    %c0_3 = arith.constant 0 : index
    %c0_4 = arith.constant 0 : index
    %4 = vector.load %arg3[%c0_3, %c0_4] : memref<1x128xf32, #tpu.memory_space<vmem>>, vector<1x128xf32>
    %5 = vector.broadcast %4 : vector<1x128xf32> to vector<16x128xf32>
    %6 = arith.addf %3, %5 : vector<16x128xf32>
    %cst_5 = arith.constant 0.000000e+00 : f32
    %7 = vector.broadcast %cst_5 : f32 to vector<16x128xf32>
    %8 = arith.maximumf %6, %7 : vector<16x128xf32>
    %c0_6 = arith.constant 0 : index
    %c0_7 = arith.constant 0 : index
    %9 = vector.load %arg19[%c0_6, %c0_7] : memref<16x128xf32, #tpu.memory_space<vmem>>, vector<16x128xf32>
    tpu.vector_store %arg19[%c0_6, %c0_7], %8 {strides = array<i32>} : memref<16x128xf32, #tpu.memory_space<vmem>>, vector<16x128xf32>,
    %10 = arith.truncf %8 : vector<16x128xf32> to vector<16x128xbf16>
    %c0_8 = arith.constant 0 : index
    %c0_9 = arith.constant 0 : index
    %11 = vector.load %arg4[%c0_8, %c0_9] : memref<128x128xbf16, #tpu.memory_space<vmem>>, vector<128x128xbf16>
    %cst_10 = arith.constant dense<0.000000e+00> : vector<16x128xf32>
    %12 = tpu.matmul %10, %11, %cst_10 {dimension_numbers = #tpu.dot_dimension_numbers<[1], [0], [0], [1], [0, 0, 1, 1], [], []>} : vector<16x128xbf16>, vector<128x128xbf16>, vector<16x128xf32> -> vector<16x128xf32>
    %c0_11 = arith.constant 0 : index
    %c0_12 = arith.constant 0 : index
    %13 = vector.load %arg5[%c0_11, %c0_12] : memref<1x128xf32, #tpu.memory_space<vmem>>, vector<1x128xf32>
    %14 = vector.broadcast %13 : vector<1x128xf32> to vector<16x128xf32>
    %15 = arith.addf %12, %14 : vector<16x128xf32>
    %cst_13 = arith.constant 0.000000e+00 : f32
    %16 = vector.broadcast %cst_13 : f32 to vector<16x128xf32>
    %17 = arith.maximumf %15, %16 : vector<16x128xf32>
    %c0_14 = arith.constant 0 : index
    %c0_15 = arith.constant 0 : index
    %18 = vector.load %arg20[%c0_14, %c0_15] : memref<16x128xf32, #tpu.memory_space<vmem>>, vector<16x128xf32>
    tpu.vector_store %arg20[%c0_14, %c0_15], %17 {strides = array<i32>} : memref<16x128xf32, #tpu.memory_space<vmem>>, vector<16x128xf32>,
    %19 = arith.truncf %17 : vector<16x128xf32> to vector<16x128xbf16>
    %c0_16 = arith.constant 0 : index
    %c0_17 = arith.constant 0 : index
    %20 = vector.load %arg6[%c0_16, %c0_17] : memref<128x128xbf16, #tpu.memory_space<vmem>>, vector<128x128xbf16>
    %cst_18 = arith.constant dense<0.000000e+00> : vector<16x128xf32>
    %21 = tpu.matmul %19, %20, %cst_18 {dimension_numbers = #tpu.dot_dimension_numbers<[1], [0], [0], [1], [0, 0, 1, 1], [], []>} : vector<16x128xbf16>, vector<128x128xbf16>, vector<16x128xf32> -> vector<16x128xf32>
    %c0_19 = arith.constant 0 : index
    %c0_20 = arith.constant 0 : index
    %22 = vector.load %arg7[%c0_19, %c0_20] : memref<1x128xf32, #tpu.memory_space<vmem>>, vector<1x128xf32>
    %23 = vector.broadcast %22 : vector<1x128xf32> to vector<16x128xf32>
    %24 = arith.addf %21, %23 : vector<16x128xf32>
    %cst_21 = arith.constant 0.000000e+00 : f32
    %25 = vector.broadcast %cst_21 : f32 to vector<16x128xf32>
    %26 = arith.maximumf %24, %25 : vector<16x128xf32>
    %c0_22 = arith.constant 0 : index
    %c0_23 = arith.constant 0 : index
    %27 = vector.load %arg21[%c0_22, %c0_23] : memref<16x128xf32, #tpu.memory_space<vmem>>, vector<16x128xf32>
    tpu.vector_store %arg21[%c0_22, %c0_23], %26 {strides = array<i32>} : memref<16x128xf32, #tpu.memory_space<vmem>>, vector<16x128xf32>,
    %28 = arith.truncf %26 : vector<16x128xf32> to vector<16x128xbf16>
    %c0_24 = arith.constant 0 : index
    %c0_25 = arith.constant 0 : index
    %29 = vector.load %arg8[%c0_24, %c0_25] : memref<128x128xbf16, #tpu.memory_space<vmem>>, vector<128x128xbf16>
    %cst_26 = arith.constant dense<0.000000e+00> : vector<16x128xf32>
    %30 = tpu.matmul %28, %29, %cst_26 {dimension_numbers = #tpu.dot_dimension_numbers<[1], [0], [0], [1], [0, 0, 1, 1], [], []>} : vector<16x128xbf16>, vector<128x128xbf16>, vector<16x128xf32> -> vector<16x128xf32>
    %c0_27 = arith.constant 0 : index
    %c0_28 = arith.constant 0 : index
    %31 = vector.load %arg9[%c0_27, %c0_28] : memref<1x128xf32, #tpu.memory_space<vmem>>, vector<1x128xf32>
    %32 = vector.broadcast %31 : vector<1x128xf32> to vector<16x128xf32>
    %33 = arith.addf %30, %32 : vector<16x128xf32>
    %c0_29 = arith.constant 0 : index
    %c0_30 = arith.constant 0 : index
    %34 = vector.load %arg22[%c0_29, %c0_30] : memref<16x128xf32, #tpu.memory_space<vmem>>, vector<16x128xf32>
    tpu.vector_store %arg22[%c0_29, %c0_30], %33 {strides = array<i32>} : memref<16x128xf32, #tpu.memory_space<vmem>>, vector<16x128xf32>,
    %35 = arith.truncf %33 : vector<16x128xf32> to vector<16x128xbf16>
    %c0_31 = arith.constant 0 : index
    %c0_32 = arith.constant 0 : index
    %36 = vector.load %arg10[%c0_31, %c0_32] : memref<128x128xbf16, #tpu.memory_space<vmem>>, vector<128x128xbf16>
    %cst_33 = arith.constant dense<0.000000e+00> : vector<16x128xf32>
    %37 = tpu.matmul %35, %36, %cst_33 {dimension_numbers = #tpu.dot_dimension_numbers<[1], [0], [0], [1], [0, 0, 1, 1], [], []>} : vector<16x128xbf16>, vector<128x128xbf16>, vector<16x128xf32> -> vector<16x128xf32>
    %c0_34 = arith.constant 0 : index
    %c0_35 = arith.constant 0 : index
    %38 = vector.load %arg11[%c0_34, %c0_35] : memref<1x128xf32, #tpu.memory_space<vmem>>, vector<1x128xf32>
    %39 = vector.broadcast %38 : vector<1x128xf32> to vector<16x128xf32>
    %40 = arith.addf %37, %39 : vector<16x128xf32>
    %cst_36 = arith.constant 0.000000e+00 : f32
    %41 = vector.broadcast %cst_36 : f32 to vector<16x128xf32>
    %42 = arith.maximumf %40, %41 : vector<16x128xf32>
    %43 = arith.truncf %42 : vector<16x128xf32> to vector<16x128xbf16>
    %c0_37 = arith.constant 0 : index
    %c0_38 = arith.constant 0 : index
    %44 = vector.load %arg12[%c0_37, %c0_38] : memref<128x128xbf16, #tpu.memory_space<vmem>>, vector<128x128xbf16>
    %cst_39 = arith.constant dense<0.000000e+00> : vector<16x128xf32>
    %45 = tpu.matmul %43, %44, %cst_39 {dimension_numbers = #tpu.dot_dimension_numbers<[1], [0], [0], [1], [0, 0, 1, 1], [], []>} : vector<16x128xbf16>, vector<128x128xbf16>, vector<16x128xf32> -> vector<16x128xf32>
    %c0_40 = arith.constant 0 : index
    %c0_41 = arith.constant 0 : index
    %46 = vector.load %arg13[%c0_40, %c0_41] : memref<1x128xf32, #tpu.memory_space<vmem>>, vector<1x128xf32>
    %47 = vector.broadcast %46 : vector<1x128xf32> to vector<16x128xf32>
    %48 = arith.addf %45, %47 : vector<16x128xf32>
    %cst_42 = arith.constant 0.000000e+00 : f32
    %49 = vector.broadcast %cst_42 : f32 to vector<16x128xf32>
    %50 = arith.maximumf %48, %49 : vector<16x128xf32>
    %51 = arith.truncf %50 : vector<16x128xf32> to vector<16x128xbf16>
    %c0_43 = arith.constant 0 : index
    %c0_44 = arith.constant 0 : index
    %52 = vector.load %arg14[%c0_43, %c0_44] : memref<128x128xbf16, #tpu.memory_space<vmem>>, vector<128x128xbf16>
    %cst_45 = arith.constant dense<0.000000e+00> : vector<16x128xf32>
    %53 = tpu.matmul %51, %52, %cst_45 {dimension_numbers = #tpu.dot_dimension_numbers<[1], [0], [0], [1], [0, 0, 1, 1], [], []>} : vector<16x128xbf16>, vector<128x128xbf16>, vector<16x128xf32> -> vector<16x128xf32>
    %c0_46 = arith.constant 0 : index
    %c0_47 = arith.constant 0 : index
    %54 = vector.load %arg15[%c0_46, %c0_47] : memref<1x128xf32, #tpu.memory_space<vmem>>, vector<1x128xf32>
    %55 = vector.broadcast %54 : vector<1x128xf32> to vector<16x128xf32>
    %56 = arith.addf %53, %55 : vector<16x128xf32>
    %cst_48 = arith.constant 0.000000e+00 : f32
    %57 = vector.broadcast %cst_48 : f32 to vector<16x128xf32>
    %58 = arith.maximumf %56, %57 : vector<16x128xf32>
    %59 = arith.truncf %58 : vector<16x128xf32> to vector<16x128xbf16>
    %c0_49 = arith.constant 0 : index
    %c0_50 = arith.constant 0 : index
    %60 = vector.load %arg16[%c0_49, %c0_50] : memref<128x128xbf16, #tpu.memory_space<vmem>>, vector<128x128xbf16>
    %cst_51 = arith.constant dense<0.000000e+00> : vector<16x128xf32>
    %61 = tpu.matmul %59, %60, %cst_51 {dimension_numbers = #tpu.dot_dimension_numbers<[1], [0], [0], [1], [0, 0, 1, 1], [], []>} : vector<16x128xbf16>, vector<128x128xbf16>, vector<16x128xf32> -> vector<16x128xf32>
    %c0_52 = arith.constant 0 : index
    %c0_53 = arith.constant 0 : index
    %62 = vector.load %arg17[%c0_52, %c0_53] : memref<1x128xf32, #tpu.memory_space<vmem>>, vector<1x128xf32>
    %63 = vector.broadcast %62 : vector<1x128xf32> to vector<16x128xf32>
    %64 = arith.addf %61, %63 : vector<16x128xf32>
    %c0_54 = arith.constant 0 : index
    %c0_55 = arith.constant 0 : index
    %65 = vector.load %arg18[%c0_54, %c0_55] : memref<16x128xf32, #tpu.memory_space<vmem>>, vector<16x128xf32>
    tpu.vector_store %arg18[%c0_54, %c0_55], %64 {strides = array<i32>} : memref<16x128xf32, #tpu.memory_space<vmem>>, vector<16x128xf32>,
    return
  }
  func.func @transform_0(%arg0: i32) -> (i32, i32) {
    %c0_i32 = arith.constant 0 : i32
    %c0_i32_0 = arith.constant 0 : i32
    return %arg0, %c0_i32 : i32, i32
  }
  func.func @transform_1(%arg0: i32) -> (i32, i32) {
    %c0_i32 = arith.constant 0 : i32
    %c0_i32_0 = arith.constant 0 : i32
    %c0_i32_1 = arith.constant 0 : i32
    return %c0_i32, %c0_i32_0 : i32, i32
  }
  func.func @transform_2(%arg0: i32) -> (i32, i32) {
    %c0_i32 = arith.constant 0 : i32
    %c0_i32_0 = arith.constant 0 : i32
    %c0_i32_1 = arith.constant 0 : i32
    return %c0_i32, %c0_i32_0 : i32, i32
  }
  func.func @transform_3(%arg0: i32) -> (i32, i32) {
    %c0_i32 = arith.constant 0 : i32
    %c0_i32_0 = arith.constant 0 : i32
    %c0_i32_1 = arith.constant 0 : i32
    return %c0_i32, %c0_i32_0 : i32, i32
  }
  func.func @transform_4(%arg0: i32) -> (i32, i32) {
    %c0_i32 = arith.constant 0 : i32
    %c0_i32_0 = arith.constant 0 : i32
    %c0_i32_1 = arith.constant 0 : i32
    return %c0_i32, %c0_i32_0 : i32, i32
  }
  func.func @transform_5(%arg0: i32) -> (i32, i32) {
    %c0_i32 = arith.constant 0 : i32
    %c0_i32_0 = arith.constant 0 : i32
    %c0_i32_1 = arith.constant 0 : i32
    return %c0_i32, %c0_i32_0 : i32, i32
  }
  func.func @transform_6(%arg0: i32) -> (i32, i32) {
    %c0_i32 = arith.constant 0 : i32
    %c0_i32_0 = arith.constant 0 : i32
    %c0_i32_1 = arith.constant 0 : i32
    return %c0_i32, %c0_i32_0 : i32, i32
  }
  func.func @transform_7(%arg0: i32) -> (i32, i32) {
    %c0_i32 = arith.constant 0 : i32
    %c0_i32_0 = arith.constant 0 : i32
    %c0_i32_1 = arith.constant 0 : i32
    return %c0_i32, %c0_i32_0 : i32, i32
  }
  func.func @transform_8(%arg0: i32) -> (i32, i32) {
    %c0_i32 = arith.constant 0 : i32
    %c0_i32_0 = arith.constant 0 : i32
    %c0_i32_1 = arith.constant 0 : i32
    return %c0_i32, %c0_i32_0 : i32, i32
  }
  func.func @transform_9(%arg0: i32) -> (i32, i32) {
    %c0_i32 = arith.constant 0 : i32
    %c0_i32_0 = arith.constant 0 : i32
    %c0_i32_1 = arith.constant 0 : i32
    return %c0_i32, %c0_i32_0 : i32, i32
  }
  func.func @transform_10(%arg0: i32) -> (i32, i32) {
    %c0_i32 = arith.constant 0 : i32
    %c0_i32_0 = arith.constant 0 : i32
    %c0_i32_1 = arith.constant 0 : i32
    return %c0_i32, %c0_i32_0 : i32, i32
  }
  func.func @transform_11(%arg0: i32) -> (i32, i32) {
    %c0_i32 = arith.constant 0 : i32
    %c0_i32_0 = arith.constant 0 : i32
    %c0_i32_1 = arith.constant 0 : i32
    return %c0_i32, %c0_i32_0 : i32, i32
  }
  func.func @transform_12(%arg0: i32) -> (i32, i32) {
    %c0_i32 = arith.constant 0 : i32
    %c0_i32_0 = arith.constant 0 : i32
    %c0_i32_1 = arith.constant 0 : i32
    return %c0_i32, %c0_i32_0 : i32, i32
  }
  func.func @transform_13(%arg0: i32) -> (i32, i32) {
    %c0_i32 = arith.constant 0 : i32
    %c0_i32_0 = arith.constant 0 : i32
    %c0_i32_1 = arith.constant 0 : i32
    return %c0_i32, %c0_i32_0 : i32, i32
  }
  func.func @transform_14(%arg0: i32) -> (i32, i32) {
    %c0_i32 = arith.constant 0 : i32
    %c0_i32_0 = arith.constant 0 : i32
    %c0_i32_1 = arith.constant 0 : i32
    return %c0_i32, %c0_i32_0 : i32, i32
  }
  func.func @transform_15(%arg0: i32) -> (i32, i32) {
    %c0_i32 = arith.constant 0 : i32
    %c0_i32_0 = arith.constant 0 : i32
    %c0_i32_1 = arith.constant 0 : i32
    return %c0_i32, %c0_i32_0 : i32, i32
  }
  func.func @transform_16(%arg0: i32) -> (i32, i32) {
    %c0_i32 = arith.constant 0 : i32
    %c0_i32_0 = arith.constant 0 : i32
    %c0_i32_1 = arith.constant 0 : i32
    return %c0_i32, %c0_i32_0 : i32, i32
  }
  func.func @transform_17(%arg0: i32) -> (i32, i32) {
    %c0_i32 = arith.constant 0 : i32
    %c0_i32_0 = arith.constant 0 : i32
    return %arg0, %c0_i32 : i32, i32
  }
  func.func @transform_18(%arg0: i32) -> (i32, i32) {
    %c0_i32 = arith.constant 0 : i32
    %c0_i32_0 = arith.constant 0 : i32
    return %arg0, %c0_i32 : i32, i32
  }
  func.func @transform_19(%arg0: i32) -> (i32, i32) {
    %c0_i32 = arith.constant 0 : i32
    %c0_i32_0 = arith.constant 0 : i32
    return %arg0, %c0_i32 : i32, i32
  }
  func.func @transform_20(%arg0: i32) -> (i32, i32) {
    %c0_i32 = arith.constant 0 : i32
    %c0_i32_0 = arith.constant 0 : i32
    return %arg0, %c0_i32 : i32, i32
  }
  func.func @transform_21(%arg0: i32) -> (i32, i32) {
    %c0_i32 = arith.constant 0 : i32
    %c0_i32_0 = arith.constant 0 : i32
    return %arg0, %c0_i32 : i32, i32
  }
}

module attributes {stable_mosaic.version = 11 : i64} {
  func.func @_ae_fused_kernel(%arg0: i32, %arg1: memref<16x128xf32, #tpu.memory_space<vmem>>, %arg2: memref<128x128xbf16, #tpu.memory_space<vmem>>, %arg3: memref<1x128xf32, #tpu.memory_space<vmem>>, %arg4: memref<128x128xbf16, #tpu.memory_space<vmem>>, %arg5: memref<1x128xf32, #tpu.memory_space<vmem>>, %arg6: memref<128x128xbf16, #tpu.memory_space<vmem>>, %arg7: memref<1x128xf32, #tpu.memory_space<vmem>>, %arg8: memref<128x128xbf16, #tpu.memory_space<vmem>>, %arg9: memref<1x128xf32, #tpu.memory_space<vmem>>, %arg10: memref<128x128xbf16, #tpu.memory_space<vmem>>, %arg11: memref<1x128xf32, #tpu.memory_space<vmem>>, %arg12: memref<128x128xbf16, #tpu.memory_space<vmem>>, %arg13: memref<1x128xf32, #tpu.memory_space<vmem>>, %arg14: memref<128x128xbf16, #tpu.memory_space<vmem>>, %arg15: memref<1x128xf32, #tpu.memory_space<vmem>>, %arg16: memref<128x128xbf16, #tpu.memory_space<vmem>>, %arg17: memref<1x128xf32, #tpu.memory_space<vmem>>, %arg18: memref<16x128xf32, #tpu.memory_space<vmem>>, %arg19: memref<16x128xf32, #tpu.memory_space<vmem>>, %arg20: memref<16x128xf32, #tpu.memory_space<vmem>>, %arg21: memref<16x128xf32, #tpu.memory_space<vmem>>, %arg22: memref<16x128xf32, #tpu.memory_space<vmem>>) attributes {dimension_semantics = [#tpu.dimension_semantics<parallel>], iteration_bounds = array<i64: 2>, scalar_prefetch = 0 : i64, scratch_operands = 0 : i64, tpu.core_type = #tpu.core_type<tc>, window_params = [{transform_indices = @transform_0, window_bounds = array<i64: 16, 128>}, {pipeline_mode = #tpu.pipeline_mode<synchronous>, transform_indices = @transform_1, window_bounds = array<i64: 128, 128>}, {pipeline_mode = #tpu.pipeline_mode<synchronous>, transform_indices = @transform_2, window_bounds = array<i64: 1, 128>}, {pipeline_mode = #tpu.pipeline_mode<synchronous>, transform_indices = @transform_3, window_bounds = array<i64: 128, 128>}, {pipeline_mode = #tpu.pipeline_mode<synchronous>, transform_indices = @transform_4, window_bounds = array<i64: 1, 128>}, {pipeline_mode = #tpu.pipeline_mode<synchronous>, transform_indices = @transform_5, window_bounds = array<i64: 128, 128>}, {pipeline_mode = #tpu.pipeline_mode<synchronous>, transform_indices = @transform_6, window_bounds = array<i64: 1, 128>}, {pipeline_mode = #tpu.pipeline_mode<synchronous>, transform_indices = @transform_7, window_bounds = array<i64: 128, 128>}, {pipeline_mode = #tpu.pipeline_mode<synchronous>, transform_indices = @transform_8, window_bounds = array<i64: 1, 128>}, {pipeline_mode = #tpu.pipeline_mode<synchronous>, transform_indices = @transform_9, window_bounds = array<i64: 128, 128>}, {pipeline_mode = #tpu.pipeline_mode<synchronous>, transform_indices = @transform_10, window_bounds = array<i64: 1, 128>}, {pipeline_mode = #tpu.pipeline_mode<synchronous>, transform_indices = @transform_11, window_bounds = array<i64: 128, 128>}, {pipeline_mode = #tpu.pipeline_mode<synchronous>, transform_indices = @transform_12, window_bounds = array<i64: 1, 128>}, {pipeline_mode = #tpu.pipeline_mode<synchronous>, transform_indices = @transform_13, window_bounds = array<i64: 128, 128>}, {pipeline_mode = #tpu.pipeline_mode<synchronous>, transform_indices = @transform_14, window_bounds = array<i64: 1, 128>}, {pipeline_mode = #tpu.pipeline_mode<synchronous>, transform_indices = @transform_15, window_bounds = array<i64: 128, 128>}, {pipeline_mode = #tpu.pipeline_mode<synchronous>, transform_indices = @transform_16, window_bounds = array<i64: 1, 128>}, {transform_indices = @transform_17, window_bounds = array<i64: 16, 128>}, {transform_indices = @transform_18, window_bounds = array<i64: 16, 128>}, {transform_indices = @transform_19, window_bounds = array<i64: 16, 128>}, {transform_indices = @transform_20, window_bounds = array<i64: 16, 128>}, {transform_indices = @transform_21, window_bounds = array<i64: 16, 128>}]} {
    %c0 = arith.constant 0 : index
    %c0_0 = arith.constant 0 : index
    %0 = vector.load %arg1[%c0, %c0_0] : memref<16x128xf32, #tpu.memory_space<vmem>>, vector<16x128xf32>
    %1 = arith.truncf %0 : vector<16x128xf32> to vector<16x128xbf16>
    %c0_1 = arith.constant 0 : index
    %c0_2 = arith.constant 0 : index
    %2 = vector.load %arg2[%c0_1, %c0_2] : memref<128x128xbf16, #tpu.memory_space<vmem>>, vector<128x128xbf16>
    %cst = arith.constant dense<0.000000e+00> : vector<16x128xf32>
    %3 = tpu.matmul %1, %2, %cst {dimension_numbers = #tpu.dot_dimension_numbers<[1], [0], [0], [1], [0, 0, 1, 1], [], []>} : vector<16x128xbf16>, vector<128x128xbf16>, vector<16x128xf32> -> vector<16x128xf32>
    %c0_3 = arith.constant 0 : index
    %c0_4 = arith.constant 0 : index
    %4 = vector.load %arg3[%c0_3, %c0_4] : memref<1x128xf32, #tpu.memory_space<vmem>>, vector<1x128xf32>
    %5 = vector.broadcast %4 : vector<1x128xf32> to vector<16x128xf32>
    %6 = arith.addf %3, %5 : vector<16x128xf32>
    %cst_5 = arith.constant 0.000000e+00 : f32
    %7 = vector.broadcast %cst_5 : f32 to vector<16x128xf32>
    %8 = arith.maximumf %6, %7 : vector<16x128xf32>
    %c0_6 = arith.constant 0 : index
    %c0_7 = arith.constant 0 : index
    %9 = vector.load %arg19[%c0_6, %c0_7] : memref<16x128xf32, #tpu.memory_space<vmem>>, vector<16x128xf32>
    tpu.vector_store %arg19[%c0_6, %c0_7], %8 {strides = array<i32>} : memref<16x128xf32, #tpu.memory_space<vmem>>, vector<16x128xf32>,
    %10 = arith.truncf %8 : vector<16x128xf32> to vector<16x128xbf16>
    %c0_8 = arith.constant 0 : index
    %c0_9 = arith.constant 0 : index
    %11 = vector.load %arg4[%c0_8, %c0_9] : memref<128x128xbf16, #tpu.memory_space<vmem>>, vector<128x128xbf16>
    %cst_10 = arith.constant dense<0.000000e+00> : vector<16x128xf32>
    %12 = tpu.matmul %10, %11, %cst_10 {dimension_numbers = #tpu.dot_dimension_numbers<[1], [0], [0], [1], [0, 0, 1, 1], [], []>} : vector<16x128xbf16>, vector<128x128xbf16>, vector<16x128xf32> -> vector<16x128xf32>
    %c0_11 = arith.constant 0 : index
    %c0_12 = arith.constant 0 : index
    %13 = vector.load %arg5[%c0_11, %c0_12] : memref<1x128xf32, #tpu.memory_space<vmem>>, vector<1x128xf32>
    %14 = vector.broadcast %13 : vector<1x128xf32> to vector<16x128xf32>
    %15 = arith.addf %12, %14 : vector<16x128xf32>
    %cst_13 = arith.constant 0.000000e+00 : f32
    %16 = vector.broadcast %cst_13 : f32 to vector<16x128xf32>
    %17 = arith.maximumf %15, %16 : vector<16x128xf32>
    %c0_14 = arith.constant 0 : index
    %c0_15 = arith.constant 0 : index
    %18 = vector.load %arg20[%c0_14, %c0_15] : memref<16x128xf32, #tpu.memory_space<vmem>>, vector<16x128xf32>
    tpu.vector_store %arg20[%c0_14, %c0_15], %17 {strides = array<i32>} : memref<16x128xf32, #tpu.memory_space<vmem>>, vector<16x128xf32>,
    %19 = arith.truncf %17 : vector<16x128xf32> to vector<16x128xbf16>
    %c0_16 = arith.constant 0 : index
    %c0_17 = arith.constant 0 : index
    %20 = vector.load %arg6[%c0_16, %c0_17] : memref<128x128xbf16, #tpu.memory_space<vmem>>, vector<128x128xbf16>
    %cst_18 = arith.constant dense<0.000000e+00> : vector<16x128xf32>
    %21 = tpu.matmul %19, %20, %cst_18 {dimension_numbers = #tpu.dot_dimension_numbers<[1], [0], [0], [1], [0, 0, 1, 1], [], []>} : vector<16x128xbf16>, vector<128x128xbf16>, vector<16x128xf32> -> vector<16x128xf32>
    %c0_19 = arith.constant 0 : index
    %c0_20 = arith.constant 0 : index
    %22 = vector.load %arg7[%c0_19, %c0_20] : memref<1x128xf32, #tpu.memory_space<vmem>>, vector<1x128xf32>
    %23 = vector.broadcast %22 : vector<1x128xf32> to vector<16x128xf32>
    %24 = arith.addf %21, %23 : vector<16x128xf32>
    %cst_21 = arith.constant 0.000000e+00 : f32
    %25 = vector.broadcast %cst_21 : f32 to vector<16x128xf32>
    %26 = arith.maximumf %24, %25 : vector<16x128xf32>
    %c0_22 = arith.constant 0 : index
    %c0_23 = arith.constant 0 : index
    %27 = vector.load %arg21[%c0_22, %c0_23] : memref<16x128xf32, #tpu.memory_space<vmem>>, vector<16x128xf32>
    tpu.vector_store %arg21[%c0_22, %c0_23], %26 {strides = array<i32>} : memref<16x128xf32, #tpu.memory_space<vmem>>, vector<16x128xf32>,
    %28 = arith.truncf %26 : vector<16x128xf32> to vector<16x128xbf16>
    %c0_24 = arith.constant 0 : index
    %c0_25 = arith.constant 0 : index
    %29 = vector.load %arg8[%c0_24, %c0_25] : memref<128x128xbf16, #tpu.memory_space<vmem>>, vector<128x128xbf16>
    %cst_26 = arith.constant dense<0.000000e+00> : vector<16x128xf32>
    %30 = tpu.matmul %28, %29, %cst_26 {dimension_numbers = #tpu.dot_dimension_numbers<[1], [0], [0], [1], [0, 0, 1, 1], [], []>} : vector<16x128xbf16>, vector<128x128xbf16>, vector<16x128xf32> -> vector<16x128xf32>
    %c0_27 = arith.constant 0 : index
    %c0_28 = arith.constant 0 : index
    %31 = vector.load %arg9[%c0_27, %c0_28] : memref<1x128xf32, #tpu.memory_space<vmem>>, vector<1x128xf32>
    %32 = vector.broadcast %31 : vector<1x128xf32> to vector<16x128xf32>
    %33 = arith.addf %30, %32 : vector<16x128xf32>
    %c0_29 = arith.constant 0 : index
    %c0_30 = arith.constant 0 : index
    %34 = vector.load %arg22[%c0_29, %c0_30] : memref<16x128xf32, #tpu.memory_space<vmem>>, vector<16x128xf32>
    tpu.vector_store %arg22[%c0_29, %c0_30], %33 {strides = array<i32>} : memref<16x128xf32, #tpu.memory_space<vmem>>, vector<16x128xf32>,
    %35 = arith.truncf %33 : vector<16x128xf32> to vector<16x128xbf16>
    %c0_31 = arith.constant 0 : index
    %c0_32 = arith.constant 0 : index
    %36 = vector.load %arg10[%c0_31, %c0_32] : memref<128x128xbf16, #tpu.memory_space<vmem>>, vector<128x128xbf16>
    %cst_33 = arith.constant dense<0.000000e+00> : vector<16x128xf32>
    %37 = tpu.matmul %35, %36, %cst_33 {dimension_numbers = #tpu.dot_dimension_numbers<[1], [0], [0], [1], [0, 0, 1, 1], [], []>} : vector<16x128xbf16>, vector<128x128xbf16>, vector<16x128xf32> -> vector<16x128xf32>
    %c0_34 = arith.constant 0 : index
    %c0_35 = arith.constant 0 : index
    %38 = vector.load %arg11[%c0_34, %c0_35] : memref<1x128xf32, #tpu.memory_space<vmem>>, vector<1x128xf32>
    %39 = vector.broadcast %38 : vector<1x128xf32> to vector<16x128xf32>
    %40 = arith.addf %37, %39 : vector<16x128xf32>
    %cst_36 = arith.constant 0.000000e+00 : f32
    %41 = vector.broadcast %cst_36 : f32 to vector<16x128xf32>
    %42 = arith.maximumf %40, %41 : vector<16x128xf32>
    %43 = arith.truncf %42 : vector<16x128xf32> to vector<16x128xbf16>
    %c0_37 = arith.constant 0 : index
    %c0_38 = arith.constant 0 : index
    %44 = vector.load %arg12[%c0_37, %c0_38] : memref<128x128xbf16, #tpu.memory_space<vmem>>, vector<128x128xbf16>
    %cst_39 = arith.constant dense<0.000000e+00> : vector<16x128xf32>
    %45 = tpu.matmul %43, %44, %cst_39 {dimension_numbers = #tpu.dot_dimension_numbers<[1], [0], [0], [1], [0, 0, 1, 1], [], []>} : vector<16x128xbf16>, vector<128x128xbf16>, vector<16x128xf32> -> vector<16x128xf32>
    %c0_40 = arith.constant 0 : index
    %c0_41 = arith.constant 0 : index
    %46 = vector.load %arg13[%c0_40, %c0_41] : memref<1x128xf32, #tpu.memory_space<vmem>>, vector<1x128xf32>
    %47 = vector.broadcast %46 : vector<1x128xf32> to vector<16x128xf32>
    %48 = arith.addf %45, %47 : vector<16x128xf32>
    %cst_42 = arith.constant 0.000000e+00 : f32
    %49 = vector.broadcast %cst_42 : f32 to vector<16x128xf32>
    %50 = arith.maximumf %48, %49 : vector<16x128xf32>
    %51 = arith.truncf %50 : vector<16x128xf32> to vector<16x128xbf16>
    %c0_43 = arith.constant 0 : index
    %c0_44 = arith.constant 0 : index
    %52 = vector.load %arg14[%c0_43, %c0_44] : memref<128x128xbf16, #tpu.memory_space<vmem>>, vector<128x128xbf16>
    %cst_45 = arith.constant dense<0.000000e+00> : vector<16x128xf32>
    %53 = tpu.matmul %51, %52, %cst_45 {dimension_numbers = #tpu.dot_dimension_numbers<[1], [0], [0], [1], [0, 0, 1, 1], [], []>} : vector<16x128xbf16>, vector<128x128xbf16>, vector<16x128xf32> -> vector<16x128xf32>
    %c0_46 = arith.constant 0 : index
    %c0_47 = arith.constant 0 : index
    %54 = vector.load %arg15[%c0_46, %c0_47] : memref<1x128xf32, #tpu.memory_space<vmem>>, vector<1x128xf32>
    %55 = vector.broadcast %54 : vector<1x128xf32> to vector<16x128xf32>
    %56 = arith.addf %53, %55 : vector<16x128xf32>
    %cst_48 = arith.constant 0.000000e+00 : f32
    %57 = vector.broadcast %cst_48 : f32 to vector<16x128xf32>
    %58 = arith.maximumf %56, %57 : vector<16x128xf32>
    %59 = arith.truncf %58 : vector<16x128xf32> to vector<16x128xbf16>
    %c0_49 = arith.constant 0 : index
    %c0_50 = arith.constant 0 : index
    %60 = vector.load %arg16[%c0_49, %c0_50] : memref<128x128xbf16, #tpu.memory_space<vmem>>, vector<128x128xbf16>
    %cst_51 = arith.constant dense<0.000000e+00> : vector<16x128xf32>
    %61 = tpu.matmul %59, %60, %cst_51 {dimension_numbers = #tpu.dot_dimension_numbers<[1], [0], [0], [1], [0, 0, 1, 1], [], []>} : vector<16x128xbf16>, vector<128x128xbf16>, vector<16x128xf32> -> vector<16x128xf32>
    %c0_52 = arith.constant 0 : index
    %c0_53 = arith.constant 0 : index
    %62 = vector.load %arg17[%c0_52, %c0_53] : memref<1x128xf32, #tpu.memory_space<vmem>>, vector<1x128xf32>
    %63 = vector.broadcast %62 : vector<1x128xf32> to vector<16x128xf32>
    %64 = arith.addf %61, %63 : vector<16x128xf32>
    %c0_54 = arith.constant 0 : index
    %c0_55 = arith.constant 0 : index
    %65 = vector.load %arg18[%c0_54, %c0_55] : memref<16x128xf32, #tpu.memory_space<vmem>>, vector<16x128xf32>
    tpu.vector_store %arg18[%c0_54, %c0_55], %64 {strides = array<i32>} : memref<16x128xf32, #tpu.memory_space<vmem>>, vector<16x128xf32>,
    return
  }
  func.func @transform_0(%arg0: i32) -> (i32, i32) {
    %c0_i32 = arith.constant 0 : i32
    %c0_i32_0 = arith.constant 0 : i32
    return %arg0, %c0_i32 : i32, i32
  }
  func.func @transform_1(%arg0: i32) -> (i32, i32) {
    %c0_i32 = arith.constant 0 : i32
    %c0_i32_0 = arith.constant 0 : i32
    %c0_i32_1 = arith.constant 0 : i32
    return %c0_i32, %c0_i32_0 : i32, i32
  }
  func.func @transform_2(%arg0: i32) -> (i32, i32) {
    %c0_i32 = arith.constant 0 : i32
    %c0_i32_0 = arith.constant 0 : i32
    %c0_i32_1 = arith.constant 0 : i32
    return %c0_i32, %c0_i32_0 : i32, i32
  }
  func.func @transform_3(%arg0: i32) -> (i32, i32) {
    %c0_i32 = arith.constant 0 : i32
    %c0_i32_0 = arith.constant 0 : i32
    %c0_i32_1 = arith.constant 0 : i32
    return %c0_i32, %c0_i32_0 : i32, i32
  }
  func.func @transform_4(%arg0: i32) -> (i32, i32) {
    %c0_i32 = arith.constant 0 : i32
    %c0_i32_0 = arith.constant 0 : i32
    %c0_i32_1 = arith.constant 0 : i32
    return %c0_i32, %c0_i32_0 : i32, i32
  }
  func.func @transform_5(%arg0: i32) -> (i32, i32) {
    %c0_i32 = arith.constant 0 : i32
    %c0_i32_0 = arith.constant 0 : i32
    %c0_i32_1 = arith.constant 0 : i32
    return %c0_i32, %c0_i32_0 : i32, i32
  }
  func.func @transform_6(%arg0: i32) -> (i32, i32) {
    %c0_i32 = arith.constant 0 : i32
    %c0_i32_0 = arith.constant 0 : i32
    %c0_i32_1 = arith.constant 0 : i32
    return %c0_i32, %c0_i32_0 : i32, i32
  }
  func.func @transform_7(%arg0: i32) -> (i32, i32) {
    %c0_i32 = arith.constant 0 : i32
    %c0_i32_0 = arith.constant 0 : i32
    %c0_i32_1 = arith.constant 0 : i32
    return %c0_i32, %c0_i32_0 : i32, i32
  }
  func.func @transform_8(%arg0: i32) -> (i32, i32) {
    %c0_i32 = arith.constant 0 : i32
    %c0_i32_0 = arith.constant 0 : i32
    %c0_i32_1 = arith.constant 0 : i32
    return %c0_i32, %c0_i32_0 : i32, i32
  }
  func.func @transform_9(%arg0: i32) -> (i32, i32) {
    %c0_i32 = arith.constant 0 : i32
    %c0_i32_0 = arith.constant 0 : i32
    %c0_i32_1 = arith.constant 0 : i32
    return %c0_i32, %c0_i32_0 : i32, i32
  }
  func.func @transform_10(%arg0: i32) -> (i32, i32) {
    %c0_i32 = arith.constant 0 : i32
    %c0_i32_0 = arith.constant 0 : i32
    %c0_i32_1 = arith.constant 0 : i32
    return %c0_i32, %c0_i32_0 : i32, i32
  }
  func.func @transform_11(%arg0: i32) -> (i32, i32) {
    %c0_i32 = arith.constant 0 : i32
    %c0_i32_0 = arith.constant 0 : i32
    %c0_i32_1 = arith.constant 0 : i32
    return %c0_i32, %c0_i32_0 : i32, i32
  }
  func.func @transform_12(%arg0: i32) -> (i32, i32) {
    %c0_i32 = arith.constant 0 : i32
    %c0_i32_0 = arith.constant 0 : i32
    %c0_i32_1 = arith.constant 0 : i32
    return %c0_i32, %c0_i32_0 : i32, i32
  }
  func.func @transform_13(%arg0: i32) -> (i32, i32) {
    %c0_i32 = arith.constant 0 : i32
    %c0_i32_0 = arith.constant 0 : i32
    %c0_i32_1 = arith.constant 0 : i32
    return %c0_i32, %c0_i32_0 : i32, i32
  }
  func.func @transform_14(%arg0: i32) -> (i32, i32) {
    %c0_i32 = arith.constant 0 : i32
    %c0_i32_0 = arith.constant 0 : i32
    %c0_i32_1 = arith.constant 0 : i32
    return %c0_i32, %c0_i32_0 : i32, i32
  }
  func.func @transform_15(%arg0: i32) -> (i32, i32) {
    %c0_i32 = arith.constant 0 : i32
    %c0_i32_0 = arith.constant 0 : i32
    %c0_i32_1 = arith.constant 0 : i32
    return %c0_i32, %c0_i32_0 : i32, i32
  }
  func.func @transform_16(%arg0: i32) -> (i32, i32) {
    %c0_i32 = arith.constant 0 : i32
    %c0_i32_0 = arith.constant 0 : i32
    %c0_i32_1 = arith.constant 0 : i32
    return %c0_i32, %c0_i32_0 : i32, i32
  }
  func.func @transform_17(%arg0: i32) -> (i32, i32) {
    %c0_i32 = arith.constant 0 : i32
    %c0_i32_0 = arith.constant 0 : i32
    return %arg0, %c0_i32 : i32, i32
  }
  func.func @transform_18(%arg0: i32) -> (i32, i32) {
    %c0_i32 = arith.constant 0 : i32
    %c0_i32_0 = arith.constant 0 : i32
    return %arg0, %c0_i32 : i32, i32
  }
  func.func @transform_19(%arg0: i32) -> (i32, i32) {
    %c0_i32 = arith.constant 0 : i32
    %c0_i32_0 = arith.constant 0 : i32
    return %arg0, %c0_i32 : i32, i32
  }
  func.func @transform_20(%arg0: i32) -> (i32, i32) {
    %c0_i32 = arith.constant 0 : i32
    %c0_i32_0 = arith.constant 0 : i32
    return %arg0, %c0_i32 : i32, i32
  }
  func.func @transform_21(%arg0: i32) -> (i32, i32) {
    %c0_i32 = arith.constant 0 : i32
    %c0_i32_0 = arith.constant 0 : i32
    return %arg0, %c0_i32 : i32, i32
  }
}

</mosaic_0001>

<bundles_post_ra>
// kernel: ae_forward.1
= control target key start
LH: loop header
LB: loop body
LE: loop exit
PB: predicated region body
PF: predicated region fallthrough
CT: control target
= control target key end

     0   :  { %s3044_s0 = inlined_call_operand.vmem [shape: f32[32,128], index: 0, kind: input, shape index: {}]   ;;  %s3045_s1 = inlined_call_operand.hbm [shape: bf16[128,128], index: 1, kind: input, shape index: {}]   ;;  %s3046_s2 = inlined_call_operand.hbm [shape: f32[1,128], index: 2, kind: input, shape index: {}]   ;;  %s3047_s3 = inlined_call_operand.hbm [shape: bf16[128,128], index: 3, kind: input, shape index: {}]   ;;  %s3048_s4 = inlined_call_operand.hbm [shape: f32[1,128], index: 4, kind: input, shape index: {}]   ;;  %s3049_s5 = inlined_call_operand.hbm [shape: bf16[128,128], index: 5, kind: input, shape index: {}]   ;;  %s3050_s6 = inlined_call_operand.hbm [shape: f32[1,128], index: 6, kind: input, shape index: {}]   ;;  %s3051_s7 = inlined_call_operand.hbm [shape: bf16[128,128], index: 7, kind: input, shape index: {}]   ;;  %s3052_s8 = inlined_call_operand.hbm [shape: f32[1,128], index: 8, kind: input, shape index: {}]   ;;  %s3053_s9 = inlined_call_operand.vmem [shape: bf16[128,128], index: 9, kind: input, shape index: {}]   ;;  %s3054_s10 = inlined_call_operand.vmem [shape: f32[1,128], index: 10, kind: input, shape index: {}]   ;;  %s3055_s11 = inlined_call_operand.hbm [shape: bf16[128,128], index: 11, kind: input, shape index: {}]   ;;  %s3056_s12 = inlined_call_operand.vmem [shape: f32[1,128], index: 12, kind: input, shape index: {}]   ;;  %s3057_s13 = inlined_call_operand.hbm [shape: bf16[128,128], index: 13, kind: input, shape index: {}]   ;;  %s3058_s14 = inlined_call_operand.vmem [shape: f32[1,128], index: 14, kind: input, shape index: {}]   ;;  %s3059_s15 = inlined_call_operand.hbm [shape: bf16[128,128], index: 15, kind: input, shape index: {}]   ;;  %s3060_s16 = inlined_call_operand.vmem [shape: f32[1,128], index: 16, kind: input, shape index: {}]   ;;  %s3061_s17 = inlined_call_operand.vmem [shape: f32[32,128], index: 17, kind: output, shape index: {0}]   ;;  %s3062_s18 = inlined_call_operand.vmem [shape: f32[32,128], index: 18, kind: output, shape index: {1}]   ;;  %s3063_s19 = inlined_call_operand.vmem [shape: f32[32,128], index: 19, kind: output, shape index: {2}]   ;;  %s3064_s20 = inlined_call_operand.vmem [shape: f32[32,128], index: 20, kind: output, shape index: {3}]   ;;  %s3065_s21 = inlined_call_operand.vmem [shape: f32[32,128], index: 21, kind: output, shape index: {4}]  }
   0x1   :  { %3067 = sst [smem:[#allocation25_spill]] %s3044_s0 }
   0x2   :  { %3068 = sst [smem:[#allocation26_spill]] %s3045_s1 }
   0x3   :  { %3069 = sst [smem:[#allocation27_spill]] %s3046_s2 }
   0x4   :  { %3070 = sst [smem:[#allocation28_spill]] %s3047_s3 }
   0x5   :  { %3071 = sst [smem:[#allocation29_spill]] %s3048_s4 }
   0x6   :  { %3072 = sst [smem:[#allocation30_spill]] %s3049_s5 }
   0x7   :  { %3073 = sst [smem:[#allocation31_spill]] %s3050_s6 }
   0x8   :  { %3074 = sst [smem:[#allocation32_spill]] %s3052_s8 }
   0x9   :  { %3075 = sst [smem:[#allocation33_spill]] %s3057_s13 }
   0xa   :  { %3076 = sst [smem:[#allocation34_spill]] %s3060_s16 }
   0xb   :  { %3077 = sst [smem:[#allocation35_spill]] %s3061_s17 }
   0xc   :  { %27 = vsyncpa [#allocation3], 0 }
   0xd   :  { %28 = vsyncpa [#allocation5], 0 }
   0xe   :  { %29 = vsyncpa [#allocation8], 0 }
   0xf   :  { %30 = vsyncpa [#allocation11], 0 }
  0x10   :  { %31 = vsyncpa [#allocation14], 0 }
  0x11   :  { %32 = vsyncpa [#allocation17], 0  ;;  %s2849_s2 = smov 0  }
  0x12 LB: > { %s3078_s27 = sld [smem:[#allocation27_spill]]  ;;  %s3066_s28 = sadd.s32 4294967295, %s2724_s2   ;;  %s2724_s2 = sphi %s2849_s2, %s38_s2  }
  0x13   : > { %p1876_p0 = scmp.ge.s32.totalorder %s2724_s2, 1  ;;  %p535_p1 = scmp.lt.s32.totalorder %s2724_s2, 3 }
  0x14   : > { %p2862_p2 = scmp.eq.s32.totalorder %s3066_s28, 0  ;;  %s2726_s4 = smov [#allocation4]  }
  0x15   : > { %p2866_p3 = pnand %p1876_p0, %p535_p1  ;;  %s563_s30 = sshll.u32 %s2726_s4, 4  ;;  %s564_s30 = int_to_ptr.vmem [resolvable:$true] %s563_s30 }
  0x16   : > { %s3081_s23 = sld [smem:[#allocation29_spill]]  ;;  %s2727_s4 = smov [#allocation7]  }
  0x17   : > { %p2279_p4 = pneg %p2866_p3  ;;  %s3082_s6 = sld [smem:[#allocation31_spill]] }
  0x18   : > { %s561_s3 = sshll.u32 %s3078_s27, 4  ;;  %s589_s28 = sshll.u32 %s2727_s4, 4  ;;  %s562_s3 = int_to_ptr.hbm [resolvable:$true] %s561_s3  ;;  %s590_s28 = int_to_ptr.vmem [resolvable:$true] %s589_s28 }
  0x19   : > { %p2880_p5 = pnand %p2862_p2, %p2279_p4  ;;  %s2728_s5 = smov [#allocation10]  }
  0x1a   : > { %s615_s22 = sshll.u32 %s2728_s5, 4  ;;  %s3084_s8 = sld [smem:[#allocation32_spill]]  ;;  %s616_s22 = int_to_ptr.vmem [resolvable:$true] %s615_s22 }
  0x1b   : > { %2285 = dma.hbm_to_vmem [thread:$0]  (!%p2880_p5), %s562_s3, 16, %s564_s30, [#allocation5]  }
  0x1c   : > { %s587_s1 = sshll.u32 %s3081_s23, 4  ;;  %s3085_s13 = sld [smem:[#allocation33_spill]]  ;;  %s588_s1 = int_to_ptr.hbm [resolvable:$true] %s587_s1 }
  0x1d   : > { %s613_s26 = sshll.u32 %s3082_s6, 4  ;;  %s2729_s6 = smov [#allocation13]   ;;  %s614_s26 = int_to_ptr.hbm [resolvable:$true] %s613_s26 }
  0x1e   : > { %2291 = dma.hbm_to_vmem [thread:$0]  (!%p2880_p5), %s588_s1, 16, %s590_s28, [#allocation8]  }
  0x1f   : > { %2297 = dma.hbm_to_vmem [thread:$0]  (!%p2880_p5), %s614_s26, 16, %s616_s22, [#allocation11]  }
  0x20   : > { %s639_s25 = sshll.u32 %s3084_s8, 4  ;;  %s641_s17 = sshll.u32 %s2729_s6, 4  ;;  %s640_s25 = int_to_ptr.hbm [resolvable:$true] %s639_s25  ;;  %s642_s17 = int_to_ptr.vmem [resolvable:$true] %s641_s17 }
  0x21   : > { %2303 = dma.hbm_to_vmem [thread:$0]  (!%p2880_p5), %s640_s25, 16, %s642_s17, [#allocation14]  }
  0x22   : > { %s673_s3 = sshll.u32 %s3085_s13, 4  ;;  %s2730_s28 = smov [#allocation16]   ;;  %s674_s3 = int_to_ptr.hbm [resolvable:$true] %s673_s3 }
  0x23   : > { %s675_s30 = sshll.u32 %s2730_s28, 4  ;;  %s3086_s23 = sld [smem:[#allocation26_spill]]  ;;  %s676_s30 = int_to_ptr.vmem [resolvable:$true] %s675_s30 }
  0x24   : > { %s2731_s26 = smov 64   ;;  %s2732_s6 = smov 4  }
  0x25   : > { %2309 = dma.hbm_to_vmem [thread:$0]  (!%p2880_p5), %s674_s3, 1024, %s676_s30, [#allocation17], %s2731_s26, %s2731_s26, %s2732_s6  }
  0x26   : > { %s3087_s17 = sld [smem:[#allocation28_spill]]  ;;  %s2733_s4 = smov [#allocation2]  }
  0x27   : > { %s548_s28 = sshll.u32 %s2733_s4, 4  ;;  %s2734_s1 = smov [#allocation6]   ;;  %s549_s28 = int_to_ptr.vmem [resolvable:$true] %s548_s28 }
  0x28   : > { %s574_s5 = sshll.u32 %s2734_s1, 4  ;;  %s3088_s13 = sld [smem:[#allocation30_spill]]  ;;  %s575_s5 = int_to_ptr.vmem [resolvable:$true] %s574_s5 }
  0x29   : > { %s546_s24 = sshll.u32 %s3086_s23, 4  ;;  %s624_s22 = sshll.u32 %s3051_s7, 4  ;;  %s547_s24 = int_to_ptr.hbm [resolvable:$true] %s546_s24  ;;  %s625_s22 = int_to_ptr.hbm [resolvable:$true] %s624_s22 }
  0x2a   : > { %2282 = dma.hbm_to_vmem [thread:$0]  (!%p2880_p5), %s547_s24, 1024, %s549_s28, [#allocation3], %s2731_s26, %s2731_s26, %s2732_s6  }
  0x2b   : > { %s2736_s8 = smov [#allocation12]   ;;  %s690_s23 = sshll.u32 %s3059_s15, 4  ;;  %s691_s23 = int_to_ptr.hbm [resolvable:$true] %s690_s23 }
  0x2c   : > { %s572_s25 = sshll.u32 %s3087_s17, 4  ;;  %s2735_s17 = smov [#allocation9]   ;;  %s573_s25 = int_to_ptr.hbm [resolvable:$true] %s572_s25 }
  0x2d   : > { %2288 = dma.hbm_to_vmem [thread:$0]  (!%p2880_p5), %s573_s25, 1024, %s575_s5, [#allocation5], %s2731_s26, %s2731_s26, %s2732_s6  }
  0x2e   : > { %s598_s3 = sshll.u32 %s3088_s13, 4  ;;  %s600_s24 = sshll.u32 %s2735_s17, 4  ;;  %s599_s3 = int_to_ptr.hbm [resolvable:$true] %s598_s3  ;;  %s601_s24 = int_to_ptr.vmem [resolvable:$true] %s600_s24 }
  0x2f   : > { %2294 = dma.hbm_to_vmem [thread:$0]  (!%p2880_p5), %s599_s3, 1024, %s601_s24, [#allocation8], %s2731_s26, %s2731_s26, %s2732_s6  }
  0x30   : > { %s626_s13 = sshll.u32 %s2736_s8, 4  ;;  %s656_s25 = sshll.u32 %s3055_s11, 4  ;;  %s627_s13 = int_to_ptr.vmem [resolvable:$true] %s626_s13  ;;  %s657_s25 = int_to_ptr.hbm [resolvable:$true] %s656_s25 }
  0x31   : > { %2300 = dma.hbm_to_vmem [thread:$0]  (!%p2880_p5), %s625_s22, 1024, %s627_s13, [#allocation11], %s2731_s26, %s2731_s26, %s2732_s6  }
  0x32   : > { %s2737_s30 = smov [#allocation15]   ;;  %s2738_s16 = smov [#allocation18]  }
  0x33   : > { %s658_s3 = sshll.u32 %s2737_s30, 4  ;;  %s692_s17 = sshll.u32 %s2738_s16, 4  ;;  %s659_s3 = int_to_ptr.vmem [resolvable:$true] %s658_s3  ;;  %s693_s17 = int_to_ptr.vmem [resolvable:$true] %s692_s17 }
  0x34   : > { %2306 = dma.hbm_to_vmem [thread:$0]  (!%p2880_p5), %s657_s25, 1024, %s659_s3, [#allocation14], %s2731_s26, %s2731_s26, %s2732_s6  }
  0x35   : > { %2312 = dma.hbm_to_vmem [thread:$0]  (!%p2880_p5), %s691_s23, 1024, %s693_s17, [#allocation17], %s2731_s26, %s2731_s26, %s2732_s6  }
  0x36   : > { %720 = sbr.rel (%p2866_p3) target bundleno = 1241 (0x4d9), region = 88 }
  0x3b   : > { %2699 = dma.done.wait (%p2862_p2), [#allocation3], 1024  }
  0x3c   : > { %2701 = vsyncadd (%p2862_p2), [#allocation3], 4294966272 }
  0x3d   : > { %2703 = dma.done.wait (%p2862_p2), [#allocation5], 1040  }
  0x3e   : > { %2705 = vsyncadd (%p2862_p2), [#allocation5], 4294966256 }
  0x3f   : > { %2707 = dma.done.wait (%p2862_p2), [#allocation8], 1040  }
  0x40   : > { %2709 = vsyncadd (%p2862_p2), [#allocation8], 4294966256 }
  0x41   : > { %2711 = dma.done.wait (%p2862_p2), [#allocation11], 1040  }
  0x42   : > { %2713 = vsyncadd (%p2862_p2), [#allocation11], 4294966256 }
  0x43   : > { %2715 = dma.done.wait (%p2862_p2), [#allocation14], 1040  }
  0x44   : > { %2717 = vsyncadd (%p2862_p2), [#allocation14], 4294966256 }
  0x45   : > { %2719 = dma.done.wait (%p2862_p2), [#allocation17], 2048  }
  0x46   : > { %2721 = vsyncadd (%p2862_p2), [#allocation17], 4294965248  ;;  %v2178_v0 = vld [vmem:[#allocation2 + $0x38] sm:$0xff]  ;;  %v2177_v1 = vld [vmem:[#allocation2 + $0x30] sm:$0xff]  ;;  %s3089_s0 = sadd.s32 4294967295, %s2724_s2   ;;  %s3090_s22 = sld [smem:[#allocation25_spill]] }
  0x47   : > { %958 = vmatpush.bf16.msra.mxu0 %v2178_v0  ;;  %v2186_v2 = vld [vmem:[#allocation6 + $0x38] sm:$0xff]  ;;  %v2176_v3 = vld [vmem:[#allocation2 + $0x28] sm:$0xff]  ;;  %v2185_v4 = vld [vmem:[#allocation6 + $0x30] sm:$0xff]  ;;  %s1901_s27 = sshll.u32 %s3089_s0, 1  ;;  %s3092_s28 = sld [smem:[#allocation35_spill]] }
  0x48   : > { %1045 = vmatpush.bf16.msra.mxu1 %v2186_v2  ;;  %v2184_v5 = vld [vmem:[#allocation6 + $0x28] sm:$0xff]  ;;  %v2175_v6 = vld [vmem:[#allocation2 + $0x20] sm:$0xff]  ;;  %p852_p6 = scmp.lt.s32.totalorder %s1901_s27, 3  ;;  %v2174_v8 = vld [vmem:[#allocation2 + $0x18] sm:$0xff] }
  0x49   : > { %v2183_v7 = vld [vmem:[#allocation6 + $0x20] sm:$0xff]  ;;  %v2173_v9 = vld [vmem:[#allocation2 + $0x10] sm:$0xff]  ;;  %v2182_v15 = vld [vmem:[#allocation6 + $0x18] sm:$0xff] }
  0x4a   : > { %s3094_s27 = smov (!%p852_p6, %s1901_s27), 3  ;;  %v2172_v10 = vld [vmem:[#allocation2 + $0x8] sm:$0xff]  ;;  %v2171_v11 = vld [vmem:[#allocation2] sm:$0xff]  ;;  %v2181_v16 = vld [vmem:[#allocation6 + $0x10] sm:$0xff] }
  0x4b   : > { %959 = vmatpush.bf16.msra.mxu0 %v2177_v1  ;;  %s2979_s29 = sshll.u32 %s3094_s27, 3  ;;  %v2180_v17 = vld [vmem:[#allocation6 + $0x8] sm:$0xff]  ;;  %v2179_v18 = vld [vmem:[#allocation6] sm:$0xff]  ;;  %v2193_v20 = vld [vmem:[#allocation9 + $0x30] sm:$0xff] }
  0x4c   : > { %1046 = vmatpush.bf16.msra.mxu1 %v2185_v4  ;;  %s855_s24 = scalar_lea.vmem %s3090_s22, %s2979_s29  ;;  %v2194_v19 = vld [vmem:[#allocation9 + $0x38] sm:$0xff]  ;;  %v2192_v21 = vld [vmem:[#allocation9 + $0x28] sm:$0xff]  ;;  %v2191_v22 = vld [vmem:[#allocation9 + $0x20] sm:$0xff]  ;;  %s867_s4 = scalar_lea.vmem %s3062_s18, %s2979_s29 }
  0x4d   : > { %v887_v12 = vld [vmem:[%s855_s24] sm:$0xff]  ;;  %v888_v13 = vld [vmem:[%s855_s24 + $0x8] sm:$0xff]  ;;  %1132 = vmatpush.bf16.msra.mxu2 %v2194_v19  ;;  %v2189_v32 = vld [vmem:[#allocation9 + $0x10] sm:$0xff]  ;;  %s873_s1 = scalar_lea.vmem %s3063_s19, %s2979_s29  ;;  %s879_s8 = scalar_lea.vmem %s3064_s20, %s2979_s29 }
  0x4e   : > { %v889_v14 = vpack.c.bf16 %v888_v13, %v887_v12  ;;  %v2356_v23 = vld [vmem:[#allocation4] ss:$0 sm:$0xff]  ;;  %v2188_v33 = vld [vmem:[#allocation9 + $0x8] sm:$0xff]  ;;  %v2187_v34 = vld [vmem:[#allocation9] sm:$0xff]  ;;  %s885_s3 = scalar_lea.vmem %s3065_s21, %s2979_s29  ;;  %s861_s25 = scalar_lea.vmem %s3092_s28, %s2979_s29 }
  0x4f   : > { %960 = vmatpush.bf16.msra.mxu0 %v2176_v3  ;;  %v2190_v31 = vld [vmem:[#allocation9 + $0x18] sm:$0xff]  ;;  %v2200_v37 = vld [vmem:[#allocation12 + $0x28] sm:$0xff]  ;;  %v2199_v38 = vld [vmem:[#allocation12 + $0x20] sm:$0xff] }
  0x50   : > { %1047 = vmatpush.bf16.msra.mxu1 %v2184_v5  ;;  %v2202_v35 = vld [vmem:[#allocation12 + $0x38] sm:$0xff]  ;;  %v2201_v36 = vld [vmem:[#allocation12 + $0x30] sm:$0xff]  ;;  %v2196_v49 = vld [vmem:[#allocation12 + $0x8] sm:$0xff] }
  0x51   : > { %1133 = vmatpush.bf16.msra.mxu2 %v2193_v20  ;;  %1219 = vmatpush.bf16.msra.mxu3 %v2202_v35  ;;  %v2357_v39 = vld [vmem:[#allocation7] ss:$0 sm:$0xff]  ;;  %v2197_v48 = vld [vmem:[#allocation12 + $0x10] sm:$0xff]  ;;  %v2195_v50 = vld [vmem:[#allocation12] sm:$0xff] }
  0x52   : > { %v2198_v47 = vld [vmem:[#allocation12 + $0x18] sm:$0xff]  ;;  %v2209_v52 = vld [vmem:[%s3053_s9 + $0x30] sm:$0xff]  ;;  %v2208_v53 = vld [vmem:[%s3053_s9 + $0x28] sm:$0xff] }
  0x53   : > { %961 = vmatpush.bf16.msra.mxu0 %v2175_v6  ;;  %v2210_v51 = vld [vmem:[%s3053_s9 + $0x38] sm:$0xff]  ;;  %v2207_v54 = vld [vmem:[%s3053_s9 + $0x20] sm:$0xff]  ;;  %v2205_v0 = vld [vmem:[%s3053_s9 + $0x10] sm:$0xff] }
  0x54   : > { %1048 = vmatpush.bf16.msra.mxu1 %v2183_v7  ;;  %v2358_v55 = vld [vmem:[#allocation10] ss:$0 sm:$0xff]  ;;  %v2206_v56 = vld [vmem:[%s3053_s9 + $0x18] sm:$0xff]  ;;  %v2204_v1 = vld [vmem:[%s3053_s9 + $0x8] sm:$0xff] }
  0x55   : > { %1134 = vmatpush.bf16.msra.mxu2 %v2192_v21  ;;  %1220 = vmatpush.bf16.msra.mxu3 %v2201_v36  ;;  %v2203_v2 = vld [vmem:[%s3053_s9] sm:$0xff]  ;;  %v2217_v4 = vld [vmem:[#allocation15 + $0x30] sm:$0xff]  ;;  %v2216_v5 = vld [vmem:[#allocation15 + $0x28] sm:$0xff] }
  0x56   : > { %v2218_v3 = vld [vmem:[#allocation15 + $0x38] sm:$0xff]  ;;  %v2215_v6 = vld [vmem:[#allocation15 + $0x20] sm:$0xff]  ;;  %v2224_v19 = vld [vmem:[#allocation16 + $0x28] sm:$0xff] }
  0x57   : > { %962 = vmatpush.bf16.msra.mxu0 %v2174_v8  ;;  %v2359_v7 = vld [vmem:[#allocation13] ss:$0 sm:$0xff]  ;;  %v2223_v20 = vld [vmem:[#allocation16 + $0x20] sm:$0xff]  ;;  %v2232_v35 = vld [vmem:[#allocation18 + $0x28] sm:$0xff] }
  0x58   : > { %1049 = vmatpush.bf16.msra.mxu1 %v2182_v15  ;;  %v2214_v13 = vld [vmem:[#allocation15 + $0x18] sm:$0xff]  ;;  %v2212_v15 = vld [vmem:[#allocation15 + $0x8] sm:$0xff]  ;;  %v2231_v36 = vld [vmem:[#allocation18 + $0x20] sm:$0xff] }
  0x59   : > { %1135 = vmatpush.bf16.msra.mxu2 %v2191_v22  ;;  %1221 = vmatpush.bf16.msra.mxu3 %v2200_v37  ;;  %v2360_v22 = vld [vmem:[%s3054_s10] ss:$0 sm:$0xff] }
  0x5b   : > { %963 = vmatpush.bf16.msra.mxu0 %v2173_v9 }
  0x5c   : > { %1050 = vmatpush.bf16.msra.mxu1 %v2181_v16  ;;  %v2211_v16 = vld [vmem:[#allocation15] sm:$0xff] }
  0x5d   : > { %1136 = vmatpush.bf16.msra.mxu2 %v2190_v31  ;;  %1222 = vmatpush.bf16.msra.mxu3 %v2199_v38  ;;  %v2220_v31 = vld [vmem:[#allocation16 + $0x8] sm:$0xff]  ;;  %v2361_v38 = vld [vmem:[%s3056_s12] ss:$0 sm:$0xff] }
  0x5f   : > { %964 = vmatpush.bf16.msra.mxu0 %v2172_v10 }
  0x60   : > { %1051 = vmatpush.bf16.msra.mxu1 %v2180_v17  ;;  %v2226_v17 = vld [vmem:[#allocation16 + $0x38] sm:$0xff] }
  0x61   : > { %1137 = vmatpush.bf16.msra.mxu2 %v2189_v32  ;;  %1223 = vmatpush.bf16.msra.mxu3 %v2198_v47  ;;  %v2219_v32 = vld [vmem:[#allocation16] sm:$0xff]  ;;  %v2228_v47 = vld [vmem:[#allocation18 + $0x8] sm:$0xff] }
  0x63   : > { %965 = vmatpush.bf16.msra.mxu0 %v2171_v11 }
  0x64   : > { %1052 = vmatpush.bf16.msra.mxu1 %v2179_v18  ;;  %v2225_v18 = vld [vmem:[#allocation16 + $0x30] sm:$0xff] }
  0x65   : > { %1138 = vmatpush.bf16.msra.mxu2 %v2188_v33  ;;  %1224 = vmatpush.bf16.msra.mxu3 %v2197_v48  ;;  %v2234_v33 = vld [vmem:[#allocation18 + $0x38] sm:$0xff]  ;;  %v2227_v48 = vld [vmem:[#allocation18] sm:$0xff] }
  0x66   : > { %966 = vmatmul.bf16.vlgmr.msra.gmra.mxu0 %v889_v14  ;;  %v2213_v14 = vld [vmem:[#allocation15 + $0x10] sm:$0xff] }
  0x67   : > { %1304 = vmatpush.bf16.msrb.mxu0 %v2210_v51 }
  0x68   : > { %1389 = vmatpush.bf16.msrb.mxu1 %v2218_v3 }
  0x69   : > { %1139 = vmatpush.bf16.msra.mxu2 %v2187_v34  ;;  %1225 = vmatpush.bf16.msra.mxu3 %v2196_v49  ;;  %v2233_v34 = vld [vmem:[#allocation18 + $0x30] sm:$0xff] }
  0x6b   : > { %1305 = vmatpush.bf16.msrb.mxu0 %v2209_v52 }
  0x6c   : > { %1390 = vmatpush.bf16.msrb.mxu1 %v2217_v4 }
  0x6d   : > { %1226 = vmatpush.bf16.msra.mxu3 %v2195_v50  ;;  %1474 = vmatpush.bf16.msrb.mxu2 %v2226_v17  ;;  %v2362_v50 = vld [vmem:[%s3058_s14] ss:$0 sm:$0xff] }
  0x6f   : > { %1306 = vmatpush.bf16.msrb.mxu0 %v2208_v53 }
  0x70   : > { %1391 = vmatpush.bf16.msrb.mxu1 %v2216_v5 }
  0x71   : > { %1475 = vmatpush.bf16.msrb.mxu2 %v2225_v18  ;;  %1559 = vmatpush.bf16.msrb.mxu3 %v2234_v33 }
  0x73   : > { %1307 = vmatpush.bf16.msrb.mxu0 %v2207_v54 }
  0x74   : > { %1392 = vmatpush.bf16.msrb.mxu1 %v2215_v6 }
  0x75   : > { %1476 = vmatpush.bf16.msrb.mxu2 %v2224_v19  ;;  %1560 = vmatpush.bf16.msrb.mxu3 %v2233_v34 }
  0x77   : > { %1308 = vmatpush.bf16.msrb.mxu0 %v2206_v56 }
  0x78   : > { %1393 = vmatpush.bf16.msrb.mxu1 %v2214_v13 }
  0x79   : > { %1477 = vmatpush.bf16.msrb.mxu2 %v2223_v20  ;;  %1561 = vmatpush.bf16.msrb.mxu3 %v2232_v35 }
  0x7b   : > { %1309 = vmatpush.bf16.msrb.mxu0 %v2205_v0 }
  0x7c   : > { %1394 = vmatpush.bf16.msrb.mxu1 %v2213_v14 }
  0x7d   : > { %1562 = vmatpush.bf16.msrb.mxu3 %v2231_v36 }
  0x7f   : > { %1310 = vmatpush.bf16.msrb.mxu0 %v2204_v1 }
  0x80   : > { %1395 = vmatpush.bf16.msrb.mxu1 %v2212_v15 }
  0x83   : > { %1311 = vmatpush.bf16.msrb.mxu0 %v2203_v2 }
  0x84   : > { %1396 = vmatpush.bf16.msrb.mxu1 %v2211_v16 }
  0xe3   : > { %v967_v24 = vpop.f32.mrf.mxu0 }
  0xe4   : > { %v968_v25 = vadd.f32 %v2356_v23, %v967_v24 }
  0xe6   : > { %v972_v26 = vmax.f32 %v968_v25, 0.0 }
  0xe8   : > { %974 = vst [vmem:[%s867_s4] sm:$0xff] %v972_v26 }
  0xeb   : > { %v969_v27 = vpop.f32.mrf.mxu0 }
  0xec   : > { %v970_v28 = vadd.f32 %v2356_v23, %v969_v27 }
  0xee   : > { %v973_v29 = vmax.f32 %v970_v28, 0.0 }
  0xf0   : > { %975 = vst [vmem:[%s867_s4 + $0x8] sm:$0xff] %v973_v29  ;;  %v976_v30 = vpack.c.bf16 %v973_v29, %v972_v26  ;;  %v2222_v29 = vld [vmem:[#allocation16 + $0x18] sm:$0xff] }
  0xf1   : > { %1478 = vmatpush.bf16.msrb.mxu2 %v2222_v29 }
  0xf2   : > { %1053 = vmatmul.bf16.vlgmr.msra.gmra.mxu1 %v976_v30  ;;  %v2221_v30 = vld [vmem:[#allocation16 + $0x10] sm:$0xff] }
  0xf5   : > { %1479 = vmatpush.bf16.msrb.mxu2 %v2221_v30 }
  0xf9   : > { %1480 = vmatpush.bf16.msrb.mxu2 %v2220_v31 }
  0xfd   : > { %1481 = vmatpush.bf16.msrb.mxu2 %v2219_v32 }
 0x16f   : > { %v1054_v40 = vpop.f32.mrf.mxu1 }
 0x170   : > { %v1055_v41 = vadd.f32 %v2357_v39, %v1054_v40 }
 0x172   : > { %v1059_v42 = vmax.f32 %v1055_v41, 0.0 }
 0x174   : > { %1061 = vst [vmem:[%s873_s1] sm:$0xff] %v1059_v42 }
 0x177   : > { %v1056_v43 = vpop.f32.mrf.mxu1 }
 0x178   : > { %v1057_v44 = vadd.f32 %v2357_v39, %v1056_v43 }
 0x17a   : > { %v1060_v45 = vmax.f32 %v1057_v44, 0.0 }
 0x17c   : > { %1062 = vst [vmem:[%s873_s1 + $0x8] sm:$0xff] %v1060_v45  ;;  %v1063_v46 = vpack.c.bf16 %v1060_v45, %v1059_v42  ;;  %v2230_v45 = vld [vmem:[#allocation18 + $0x18] sm:$0xff] }
 0x17d   : > { %1563 = vmatpush.bf16.msrb.mxu3 %v2230_v45 }
 0x17e   : > { %1140 = vmatmul.bf16.vlgmr.msra.gmra.mxu2 %v1063_v46  ;;  %v2229_v46 = vld [vmem:[#allocation18 + $0x10] sm:$0xff] }
 0x181   : > { %1564 = vmatpush.bf16.msrb.mxu3 %v2229_v46 }
 0x185   : > { %1565 = vmatpush.bf16.msrb.mxu3 %v2228_v47 }
 0x189   : > { %1566 = vmatpush.bf16.msrb.mxu3 %v2227_v48 }
 0x201   : > { %v1141_v57 = vpop.f32.mrf.mxu2 }
 0x202   : > { %v1142_v58 = vadd.f32 %v2358_v55, %v1141_v57 }
 0x204   : > { %v1146_v59 = vmax.f32 %v1142_v58, 0.0 }
 0x206   : > { %1148 = vst [vmem:[%s879_s8] sm:$0xff] %v1146_v59 }
 0x209   : > { %v1143_v60 = vpop.f32.mrf.mxu2 }
 0x20a   : > { %v1144_v61 = vadd.f32 %v2358_v55, %v1143_v60 }
 0x20c   : > { %v1147_v62 = vmax.f32 %v1144_v61, 0.0 }
 0x20e   : > { %1149 = vst [vmem:[%s879_s8 + $0x8] sm:$0xff] %v1147_v62  ;;  %v1150_v63 = vpack.c.bf16 %v1147_v62, %v1146_v59  ;;  %s3091_s8 = sld [smem:[#allocation34_spill]] }
 0x210   : > { %1227 = vmatmul.bf16.vlgmr.msra.gmra.mxu3 %v1150_v63 }
 0x214   : > { %v2363_v57 = vld [vmem:[%s3091_s8] ss:$0 sm:$0xff] }
 0x293   : > { %v1228_v8 = vpop.f32.mrf.mxu3 }
 0x294   : > { %v1229_v9 = vadd.f32 %v2359_v7, %v1228_v8 }
 0x296   : > { %1233 = vst [vmem:[%s885_s3] sm:$0xff] %v1229_v9 }
 0x29b   : > { %v1230_v10 = vpop.f32.mrf.mxu3 }
 0x29c   : > { %v1231_v11 = vadd.f32 %v2359_v7, %v1230_v10 }
 0x29e   : > { %1234 = vst [vmem:[%s885_s3 + $0x8] sm:$0xff] %v1231_v11  ;;  %v1235_v12 = vpack.c.bf16 %v1231_v11, %v1229_v9 }
 0x2a0   : > { %1312 = vmatmul.bf16.vlgmr.msrb.gmra.mxu0 %v1235_v12 }
 0x31d   : > { %v1313_v21 = vpop.f32.mrf.mxu0 }
 0x31e   : > { %v1314_v23 = vadd.f32 %v2360_v22, %v1313_v21 }
 0x320   : > { %v1318_v26 = vmax.f32 %v1314_v23, 0.0 }
 0x325   : > { %v1315_v24 = vpop.f32.mrf.mxu0 }
 0x326   : > { %v1316_v25 = vadd.f32 %v2360_v22, %v1315_v24 }
 0x328   : > { %v1319_v27 = vmax.f32 %v1316_v25, 0.0 }
 0x32a   : > { %v1320_v28 = vpack.c.bf16 %v1319_v27, %v1318_v26 }
 0x32c   : > { %1397 = vmatmul.bf16.vlgmr.msrb.gmra.mxu1 %v1320_v28 }
 0x3a9   : > { %v1398_v37 = vpop.f32.mrf.mxu1 }
 0x3aa   : > { %v1399_v39 = vadd.f32 %v2361_v38, %v1398_v37 }
 0x3ac   : > { %v1403_v42 = vmax.f32 %v1399_v39, 0.0 }
 0x3b1   : > { %v1400_v40 = vpop.f32.mrf.mxu1 }
 0x3b2   : > { %v1401_v41 = vadd.f32 %v2361_v38, %v1400_v40 }
 0x3b4   : > { %v1404_v43 = vmax.f32 %v1401_v41, 0.0 }
 0x3b6   : > { %v1405_v44 = vpack.c.bf16 %v1404_v43, %v1403_v42 }
 0x3b8   : > { %1482 = vmatmul.bf16.vlgmr.msrb.gmra.mxu2 %v1405_v44 }
 0x43b   : > { %v1483_v49 = vpop.f32.mrf.mxu2 }
 0x43c   : > { %v1484_v51 = vadd.f32 %v2362_v50, %v1483_v49 }
 0x43e   : > { %v1488_v54 = vmax.f32 %v1484_v51, 0.0 }
 0x443   : > { %v1485_v52 = vpop.f32.mrf.mxu2 }
 0x444   : > { %v1486_v53 = vadd.f32 %v2362_v50, %v1485_v52 }
 0x446   : > { %v1489_v55 = vmax.f32 %v1486_v53, 0.0 }
 0x448   : > { %v1490_v56 = vpack.c.bf16 %v1489_v55, %v1488_v54 }
 0x44a   : > { %1567 = vmatmul.bf16.vlgmr.msrb.gmra.mxu3 %v1490_v56 }
 0x4cd   : > { %v1568_v58 = vpop.f32.mrf.mxu3 }
 0x4ce   : > { %v1569_v59 = vadd.f32 %v2363_v57, %v1568_v58 }
 0x4d0   : > { %1573 = vst [vmem:[%s861_s25] sm:$0xff] %v1569_v59 }
 0x4d5   : > { %v1570_v60 = vpop.f32.mrf.mxu3 }
 0x4d6   : > { %v1571_v61 = vadd.f32 %v2363_v57, %v1570_v60 }
 0x4d8   : > { %1574 = vst [vmem:[%s861_s25 + $0x8] sm:$0xff] %v1571_v61 }
 0x4d9 PF: > { %s38_s2 = sadd.s32 1, %s2724_s2  }
 0x4da   : > { %p35_p7 = scmp.ge.s32.totalorder %s38_s2, 4  }
 0x4dc   :  { %37 = sbr.rel (!%p35_p7) target bundleno = 18 (0x12), region = 211 }
 0x4e1   :  { %1665 = vsyncpa [#allocation3], 1 }
 0x4e2   :  { %1667 = vsyncpa [#allocation3 + $0x1], 1 }
 0x4e3   :  { %1668 = vsyncpa [#allocation5], 1 }
 0x4e4   :  { %1669 = vsyncpa [#allocation8], 1 }
 0x4e5   :  { %1670 = vsyncpa [#allocation11], 1 }
 0x4e6   :  { %1671 = vsyncpa [#allocation14], 1 }
 0x4e7   :  { %1672 = vsyncpa [#allocation17], 1 }

// kernel: ae_forward.1
= control target key start
LH: loop header
LB: loop body
LE: loop exit
PB: predicated region body
PF: predicated region fallthrough
CT: control target
= control target key end

     0   :  { %s3044_s0 = inlined_call_operand.vmem [shape: f32[32,128], index: 0, kind: input, shape index: {}]   ;;  %s3045_s1 = inlined_call_operand.hbm [shape: bf16[128,128], index: 1, kind: input, shape index: {}]   ;;  %s3046_s2 = inlined_call_operand.hbm [shape: f32[1,128], index: 2, kind: input, shape index: {}]   ;;  %s3047_s3 = inlined_call_operand.hbm [shape: bf16[128,128], index: 3, kind: input, shape index: {}]   ;;  %s3048_s4 = inlined_call_operand.hbm [shape: f32[1,128], index: 4, kind: input, shape index: {}]   ;;  %s3049_s5 = inlined_call_operand.hbm [shape: bf16[128,128], index: 5, kind: input, shape index: {}]   ;;  %s3050_s6 = inlined_call_operand.hbm [shape: f32[1,128], index: 6, kind: input, shape index: {}]   ;;  %s3051_s7 = inlined_call_operand.hbm [shape: bf16[128,128], index: 7, kind: input, shape index: {}]   ;;  %s3052_s8 = inlined_call_operand.hbm [shape: f32[1,128], index: 8, kind: input, shape index: {}]   ;;  %s3053_s9 = inlined_call_operand.vmem [shape: bf16[128,128], index: 9, kind: input, shape index: {}]   ;;  %s3054_s10 = inlined_call_operand.vmem [shape: f32[1,128], index: 10, kind: input, shape index: {}]   ;;  %s3055_s11 = inlined_call_operand.hbm [shape: bf16[128,128], index: 11, kind: input, shape index: {}]   ;;  %s3056_s12 = inlined_call_operand.vmem [shape: f32[1,128], index: 12, kind: input, shape index: {}]   ;;  %s3057_s13 = inlined_call_operand.hbm [shape: bf16[128,128], index: 13, kind: input, shape index: {}]   ;;  %s3058_s14 = inlined_call_operand.vmem [shape: f32[1,128], index: 14, kind: input, shape index: {}]   ;;  %s3059_s15 = inlined_call_operand.hbm [shape: bf16[128,128], index: 15, kind: input, shape index: {}]   ;;  %s3060_s16 = inlined_call_operand.vmem [shape: f32[1,128], index: 16, kind: input, shape index: {}]   ;;  %s3061_s17 = inlined_call_operand.vmem [shape: f32[32,128], index: 17, kind: output, shape index: {0}]   ;;  %s3062_s18 = inlined_call_operand.vmem [shape: f32[32,128], index: 18, kind: output, shape index: {1}]   ;;  %s3063_s19 = inlined_call_operand.vmem [shape: f32[32,128], index: 19, kind: output, shape index: {2}]   ;;  %s3064_s20 = inlined_call_operand.vmem [shape: f32[32,128], index: 20, kind: output, shape index: {3}]   ;;  %s3065_s21 = inlined_call_operand.vmem [shape: f32[32,128], index: 21, kind: output, shape index: {4}]  }
   0x1   :  { %3067 = sst [smem:[#allocation25_spill]] %s3044_s0 }
   0x2   :  { %3068 = sst [smem:[#allocation26_spill]] %s3045_s1 }
   0x3   :  { %3069 = sst [smem:[#allocation27_spill]] %s3046_s2 }
   0x4   :  { %3070 = sst [smem:[#allocation28_spill]] %s3047_s3 }
   0x5   :  { %3071 = sst [smem:[#allocation29_spill]] %s3048_s4 }
   0x6   :  { %3072 = sst [smem:[#allocation30_spill]] %s3049_s5 }
   0x7   :  { %3073 = sst [smem:[#allocation31_spill]] %s3050_s6 }
   0x8   :  { %3074 = sst [smem:[#allocation32_spill]] %s3052_s8 }
   0x9   :  { %3075 = sst [smem:[#allocation33_spill]] %s3057_s13 }
   0xa   :  { %3076 = sst [smem:[#allocation34_spill]] %s3060_s16 }
   0xb   :  { %3077 = sst [smem:[#allocation35_spill]] %s3061_s17 }
   0xc   :  { %27 = vsyncpa [#allocation3], 0 }
   0xd   :  { %28 = vsyncpa [#allocation5], 0 }
   0xe   :  { %29 = vsyncpa [#allocation8], 0 }
   0xf   :  { %30 = vsyncpa [#allocation11], 0 }
  0x10   :  { %31 = vsyncpa [#allocation14], 0 }
  0x11   :  { %32 = vsyncpa [#allocation17], 0  ;;  %s2849_s2 = smov 0  }
  0x12 LB: > { %s3078_s27 = sld [smem:[#allocation27_spill]]  ;;  %s3066_s28 = sadd.s32 4294967295, %s2724_s2   ;;  %s2724_s2 = sphi %s2849_s2, %s38_s2  }
  0x13   : > { %p1876_p0 = scmp.ge.s32.totalorder %s2724_s2, 1  ;;  %p535_p1 = scmp.lt.s32.totalorder %s2724_s2, 3 }
  0x14   : > { %p2862_p2 = scmp.eq.s32.totalorder %s3066_s28, 0  ;;  %s2726_s4 = smov [#allocation4]  }
  0x15   : > { %p2866_p3 = pnand %p1876_p0, %p535_p1  ;;  %s563_s30 = sshll.u32 %s2726_s4, 4  ;;  %s564_s30 = int_to_ptr.vmem [resolvable:$true] %s563_s30 }
  0x16   : > { %s3081_s23 = sld [smem:[#allocation29_spill]]  ;;  %s2727_s4 = smov [#allocation7]  }
  0x17   : > { %p2279_p4 = pneg %p2866_p3  ;;  %s3082_s6 = sld [smem:[#allocation31_spill]] }
  0x18   : > { %s561_s3 = sshll.u32 %s3078_s27, 4  ;;  %s589_s28 = sshll.u32 %s2727_s4, 4  ;;  %s562_s3 = int_to_ptr.hbm [resolvable:$true] %s561_s3  ;;  %s590_s28 = int_to_ptr.vmem [resolvable:$true] %s589_s28 }
  0x19   : > { %p2880_p5 = pnand %p2862_p2, %p2279_p4  ;;  %s2728_s5 = smov [#allocation10]  }
  0x1a   : > { %s615_s22 = sshll.u32 %s2728_s5, 4  ;;  %s3084_s8 = sld [smem:[#allocation32_spill]]  ;;  %s616_s22 = int_to_ptr.vmem [resolvable:$true] %s615_s22 }
  0x1b   : > { %2285 = dma.hbm_to_vmem [thread:$0]  (!%p2880_p5), %s562_s3, 16, %s564_s30, [#allocation5]  }
  0x1c   : > { %s587_s1 = sshll.u32 %s3081_s23, 4  ;;  %s3085_s13 = sld [smem:[#allocation33_spill]]  ;;  %s588_s1 = int_to_ptr.hbm [resolvable:$true] %s587_s1 }
  0x1d   : > { %s613_s26 = sshll.u32 %s3082_s6, 4  ;;  %s2729_s6 = smov [#allocation13]   ;;  %s614_s26 = int_to_ptr.hbm [resolvable:$true] %s613_s26 }
  0x1e   : > { %2291 = dma.hbm_to_vmem [thread:$0]  (!%p2880_p5), %s588_s1, 16, %s590_s28, [#allocation8]  }
  0x1f   : > { %2297 = dma.hbm_to_vmem [thread:$0]  (!%p2880_p5), %s614_s26, 16, %s616_s22, [#allocation11]  }
  0x20   : > { %s639_s25 = sshll.u32 %s3084_s8, 4  ;;  %s641_s17 = sshll.u32 %s2729_s6, 4  ;;  %s640_s25 = int_to_ptr.hbm [resolvable:$true] %s639_s25  ;;  %s642_s17 = int_to_ptr.vmem [resolvable:$true] %s641_s17 }
  0x21   : > { %2303 = dma.hbm_to_vmem [thread:$0]  (!%p2880_p5), %s640_s25, 16, %s642_s17, [#allocation14]  }
  0x22   : > { %s673_s3 = sshll.u32 %s3085_s13, 4  ;;  %s2730_s28 = smov [#allocation16]   ;;  %s674_s3 = int_to_ptr.hbm [resolvable:$true] %s673_s3 }
  0x23   : > { %s675_s30 = sshll.u32 %s2730_s28, 4  ;;  %s3086_s23 = sld [smem:[#allocation26_spill]]  ;;  %s676_s30 = int_to_ptr.vmem [resolvable:$true] %s675_s30 }
  0x24   : > { %s2731_s26 = smov 64   ;;  %s2732_s6 = smov 4  }
  0x25   : > { %2309 = dma.hbm_to_vmem [thread:$0]  (!%p2880_p5), %s674_s3, 1024, %s676_s30, [#allocation17], %s2731_s26, %s2731_s26, %s2732_s6  }
  0x26   : > { %s3087_s17 = sld [smem:[#allocation28_spill]]  ;;  %s2733_s4 = smov [#allocation2]  }
  0x27   : > { %s548_s28 = sshll.u32 %s2733_s4, 4  ;;  %s2734_s1 = smov [#allocation6]   ;;  %s549_s28 = int_to_ptr.vmem [resolvable:$true] %s548_s28 }
  0x28   : > { %s574_s5 = sshll.u32 %s2734_s1, 4  ;;  %s3088_s13 = sld [smem:[#allocation30_spill]]  ;;  %s575_s5 = int_to_ptr.vmem [resolvable:$true] %s574_s5 }
  0x29   : > { %s546_s24 = sshll.u32 %s3086_s23, 4  ;;  %s624_s22 = sshll.u32 %s3051_s7, 4  ;;  %s547_s24 = int_to_ptr.hbm [resolvable:$true] %s546_s24  ;;  %s625_s22 = int_to_ptr.hbm [resolvable:$true] %s624_s22 }
  0x2a   : > { %2282 = dma.hbm_to_vmem [thread:$0]  (!%p2880_p5), %s547_s24, 1024, %s549_s28, [#allocation3], %s2731_s26, %s2731_s26, %s2732_s6  }
  0x2b   : > { %s2736_s8 = smov [#allocation12]   ;;  %s690_s23 = sshll.u32 %s3059_s15, 4  ;;  %s691_s23 = int_to_ptr.hbm [resolvable:$true] %s690_s23 }
  0x2c   : > { %s572_s25 = sshll.u32 %s3087_s17, 4  ;;  %s2735_s17 = smov [#allocation9]   ;;  %s573_s25 = int_to_ptr.hbm [resolvable:$true] %s572_s25 }
  0x2d   : > { %2288 = dma.hbm_to_vmem [thread:$0]  (!%p2880_p5), %s573_s25, 1024, %s575_s5, [#allocation5], %s2731_s26, %s2731_s26, %s2732_s6  }
  0x2e   : > { %s598_s3 = sshll.u32 %s3088_s13, 4  ;;  %s600_s24 = sshll.u32 %s2735_s17, 4  ;;  %s599_s3 = int_to_ptr.hbm [resolvable:$true] %s598_s3  ;;  %s601_s24 = int_to_ptr.vmem [resolvable:$true] %s600_s24 }
  0x2f   : > { %2294 = dma.hbm_to_vmem [thread:$0]  (!%p2880_p5), %s599_s3, 1024, %s601_s24, [#allocation8], %s2731_s26, %s2731_s26, %s2732_s6  }
  0x30   : > { %s626_s13 = sshll.u32 %s2736_s8, 4  ;;  %s656_s25 = sshll.u32 %s3055_s11, 4  ;;  %s627_s13 = int_to_ptr.vmem [resolvable:$true] %s626_s13  ;;  %s657_s25 = int_to_ptr.hbm [resolvable:$true] %s656_s25 }
  0x31   : > { %2300 = dma.hbm_to_vmem [thread:$0]  (!%p2880_p5), %s625_s22, 1024, %s627_s13, [#allocation11], %s2731_s26, %s2731_s26, %s2732_s6  }
  0x32   : > { %s2737_s30 = smov [#allocation15]   ;;  %s2738_s16 = smov [#allocation18]  }
  0x33   : > { %s658_s3 = sshll.u32 %s2737_s30, 4  ;;  %s692_s17 = sshll.u32 %s2738_s16, 4  ;;  %s659_s3 = int_to_ptr.vmem [resolvable:$true] %s658_s3  ;;  %s693_s17 = int_to_ptr.vmem [resolvable:$true] %s692_s17 }
  0x34   : > { %2306 = dma.hbm_to_vmem [thread:$0]  (!%p2880_p5), %s657_s25, 1024, %s659_s3, [#allocation14], %s2731_s26, %s2731_s26, %s2732_s6  }
  0x35   : > { %2312 = dma.hbm_to_vmem [thread:$0]  (!%p2880_p5), %s691_s23, 1024, %s693_s17, [#allocation17], %s2731_s26, %s2731_s26, %s2732_s6  }
  0x36   : > { %720 = sbr.rel (%p2866_p3) target bundleno = 1241 (0x4d9), region = 88 }
  0x3b   : > { %2699 = dma.done.wait (%p2862_p2), [#allocation3], 1024  }
  0x3c   : > { %2701 = vsyncadd (%p2862_p2), [#allocation3], 4294966272 }
  0x3d   : > { %2703 = dma.done.wait (%p2862_p2), [#allocation5], 1040  }
  0x3e   : > { %2705 = vsyncadd (%p2862_p2), [#allocation5], 4294966256 }
  0x3f   : > { %2707 = dma.done.wait (%p2862_p2), [#allocation8], 1040  }
  0x40   : > { %2709 = vsyncadd (%p2862_p2), [#allocation8], 4294966256 }
  0x41   : > { %2711 = dma.done.wait (%p2862_p2), [#allocation11], 1040  }
  0x42   : > { %2713 = vsyncadd (%p2862_p2), [#allocation11], 4294966256 }
  0x43   : > { %2715 = dma.done.wait (%p2862_p2), [#allocation14], 1040  }
  0x44   : > { %2717 = vsyncadd (%p2862_p2), [#allocation14], 4294966256 }
  0x45   : > { %2719 = dma.done.wait (%p2862_p2), [#allocation17], 2048  }
  0x46   : > { %2721 = vsyncadd (%p2862_p2), [#allocation17], 4294965248  ;;  %v2178_v0 = vld [vmem:[#allocation2 + $0x38] sm:$0xff]  ;;  %v2177_v1 = vld [vmem:[#allocation2 + $0x30] sm:$0xff]  ;;  %s3089_s0 = sadd.s32 4294967295, %s2724_s2   ;;  %s3090_s22 = sld [smem:[#allocation25_spill]] }
  0x47   : > { %958 = vmatpush.bf16.msra.mxu0 %v2178_v0  ;;  %v2186_v2 = vld [vmem:[#allocation6 + $0x38] sm:$0xff]  ;;  %v2176_v3 = vld [vmem:[#allocation2 + $0x28] sm:$0xff]  ;;  %v2185_v4 = vld [vmem:[#allocation6 + $0x30] sm:$0xff]  ;;  %s1901_s27 = sshll.u32 %s3089_s0, 1  ;;  %s3092_s28 = sld [smem:[#allocation35_spill]] }
  0x48   : > { %1045 = vmatpush.bf16.msra.mxu1 %v2186_v2  ;;  %v2184_v5 = vld [vmem:[#allocation6 + $0x28] sm:$0xff]  ;;  %v2175_v6 = vld [vmem:[#allocation2 + $0x20] sm:$0xff]  ;;  %p852_p6 = scmp.lt.s32.totalorder %s1901_s27, 3  ;;  %v2174_v8 = vld [vmem:[#allocation2 + $0x18] sm:$0xff] }
  0x49   : > { %v2183_v7 = vld [vmem:[#allocation6 + $0x20] sm:$0xff]  ;;  %v2173_v9 = vld [vmem:[#allocation2 + $0x10] sm:$0xff]  ;;  %v2182_v15 = vld [vmem:[#allocation6 + $0x18] sm:$0xff] }
  0x4a   : > { %s3094_s27 = smov (!%p852_p6, %s1901_s27), 3  ;;  %v2172_v10 = vld [vmem:[#allocation2 + $0x8] sm:$0xff]  ;;  %v2171_v11 = vld [vmem:[#allocation2] sm:$0xff]  ;;  %v2181_v16 = vld [vmem:[#allocation6 + $0x10] sm:$0xff] }
  0x4b   : > { %959 = vmatpush.bf16.msra.mxu0 %v2177_v1  ;;  %s2979_s29 = sshll.u32 %s3094_s27, 3  ;;  %v2180_v17 = vld [vmem:[#allocation6 + $0x8] sm:$0xff]  ;;  %v2179_v18 = vld [vmem:[#allocation6] sm:$0xff]  ;;  %v2193_v20 = vld [vmem:[#allocation9 + $0x30] sm:$0xff] }
  0x4c   : > { %1046 = vmatpush.bf16.msra.mxu1 %v2185_v4  ;;  %s855_s24 = scalar_lea.vmem %s3090_s22, %s2979_s29  ;;  %v2194_v19 = vld [vmem:[#allocation9 + $0x38] sm:$0xff]  ;;  %v2192_v21 = vld [vmem:[#allocation9 + $0x28] sm:$0xff]  ;;  %v2191_v22 = vld [vmem:[#allocation9 + $0x20] sm:$0xff]  ;;  %s867_s4 = scalar_lea.vmem %s3062_s18, %s2979_s29 }
  0x4d   : > { %v887_v12 = vld [vmem:[%s855_s24] sm:$0xff]  ;;  %v888_v13 = vld [vmem:[%s855_s24 + $0x8] sm:$0xff]  ;;  %1132 = vmatpush.bf16.msra.mxu2 %v2194_v19  ;;  %v2189_v32 = vld [vmem:[#allocation9 + $0x10] sm:$0xff]  ;;  %s873_s1 = scalar_lea.vmem %s3063_s19, %s2979_s29  ;;  %s879_s8 = scalar_lea.vmem %s3064_s20, %s2979_s29 }
  0x4e   : > { %v889_v14 = vpack.c.bf16 %v888_v13, %v887_v12  ;;  %v2356_v23 = vld [vmem:[#allocation4] ss:$0 sm:$0xff]  ;;  %v2188_v33 = vld [vmem:[#allocation9 + $0x8] sm:$0xff]  ;;  %v2187_v34 = vld [vmem:[#allocation9] sm:$0xff]  ;;  %s885_s3 = scalar_lea.vmem %s3065_s21, %s2979_s29  ;;  %s861_s25 = scalar_lea.vmem %s3092_s28, %s2979_s29 }
  0x4f   : > { %960 = vmatpush.bf16.msra.mxu0 %v2176_v3  ;;  %v2190_v31 = vld [vmem:[#allocation9 + $0x18] sm:$0xff]  ;;  %v2200_v37 = vld [vmem:[#allocation12 + $0x28] sm:$0xff]  ;;  %v2199_v38 = vld [vmem:[#allocation12 + $0x20] sm:$0xff] }
  0x50   : > { %1047 = vmatpush.bf16.msra.mxu1 %v2184_v5  ;;  %v2202_v35 = vld [vmem:[#allocation12 + $0x38] sm:$0xff]  ;;  %v2201_v36 = vld [vmem:[#allocation12 + $0x30] sm:$0xff]  ;;  %v2196_v49 = vld [vmem:[#allocation12 + $0x8] sm:$0xff] }
  0x51   : > { %1133 = vmatpush.bf16.msra.mxu2 %v2193_v20  ;;  %1219 = vmatpush.bf16.msra.mxu3 %v2202_v35  ;;  %v2357_v39 = vld [vmem:[#allocation7] ss:$0 sm:$0xff]  ;;  %v2197_v48 = vld [vmem:[#allocation12 + $0x10] sm:$0xff]  ;;  %v2195_v50 = vld [vmem:[#allocation12] sm:$0xff] }
  0x52   : > { %v2198_v47 = vld [vmem:[#allocation12 + $0x18] sm:$0xff]  ;;  %v2209_v52 = vld [vmem:[%s3053_s9 + $0x30] sm:$0xff]  ;;  %v2208_v53 = vld [vmem:[%s3053_s9 + $0x28] sm:$0xff] }
  0x53   : > { %961 = vmatpush.bf16.msra.mxu0 %v2175_v6  ;;  %v2210_v51 = vld [vmem:[%s3053_s9 + $0x38] sm:$0xff]  ;;  %v2207_v54 = vld [vmem:[%s3053_s9 + $0x20] sm:$0xff]  ;;  %v2205_v0 = vld [vmem:[%s3053_s9 + $0x10] sm:$0xff] }
  0x54   : > { %1048 = vmatpush.bf16.msra.mxu1 %v2183_v7  ;;  %v2358_v55 = vld [vmem:[#allocation10] ss:$0 sm:$0xff]  ;;  %v2206_v56 = vld [vmem:[%s3053_s9 + $0x18] sm:$0xff]  ;;  %v2204_v1 = vld [vmem:[%s3053_s9 + $0x8] sm:$0xff] }
  0x55   : > { %1134 = vmatpush.bf16.msra.mxu2 %v2192_v21  ;;  %1220 = vmatpush.bf16.msra.mxu3 %v2201_v36  ;;  %v2203_v2 = vld [vmem:[%s3053_s9] sm:$0xff]  ;;  %v2217_v4 = vld [vmem:[#allocation15 + $0x30] sm:$0xff]  ;;  %v2216_v5 = vld [vmem:[#allocation15 + $0x28] sm:$0xff] }
  0x56   : > { %v2218_v3 = vld [vmem:[#allocation15 + $0x38] sm:$0xff]  ;;  %v2215_v6 = vld [vmem:[#allocation15 + $0x20] sm:$0xff]  ;;  %v2224_v19 = vld [vmem:[#allocation16 + $0x28] sm:$0xff] }
  0x57   : > { %962 = vmatpush.bf16.msra.mxu0 %v2174_v8  ;;  %v2359_v7 = vld [vmem:[#allocation13] ss:$0 sm:$0xff]  ;;  %v2223_v20 = vld [vmem:[#allocation16 + $0x20] sm:$0xff]  ;;  %v2232_v35 = vld [vmem:[#allocation18 + $0x28] sm:$0xff] }
  0x58   : > { %1049 = vmatpush.bf16.msra.mxu1 %v2182_v15  ;;  %v2214_v13 = vld [vmem:[#allocation15 + $0x18] sm:$0xff]  ;;  %v2212_v15 = vld [vmem:[#allocation15 + $0x8] sm:$0xff]  ;;  %v2231_v36 = vld [vmem:[#allocation18 + $0x20] sm:$0xff] }
  0x59   : > { %1135 = vmatpush.bf16.msra.mxu2 %v2191_v22  ;;  %1221 = vmatpush.bf16.msra.mxu3 %v2200_v37  ;;  %v2360_v22 = vld [vmem:[%s3054_s10] ss:$0 sm:$0xff] }
  0x5b   : > { %963 = vmatpush.bf16.msra.mxu0 %v2173_v9 }
  0x5c   : > { %1050 = vmatpush.bf16.msra.mxu1 %v2181_v16  ;;  %v2211_v16 = vld [vmem:[#allocation15] sm:$0xff] }
  0x5d   : > { %1136 = vmatpush.bf16.msra.mxu2 %v2190_v31  ;;  %1222 = vmatpush.bf16.msra.mxu3 %v2199_v38  ;;  %v2220_v31 = vld [vmem:[#allocation16 + $0x8] sm:$0xff]  ;;  %v2361_v38 = vld [vmem:[%s3056_s12] ss:$0 sm:$0xff] }
  0x5f   : > { %964 = vmatpush.bf16.msra.mxu0 %v2172_v10 }
  0x60   : > { %1051 = vmatpush.bf16.msra.mxu1 %v2180_v17  ;;  %v2226_v17 = vld [vmem:[#allocation16 + $0x38] sm:$0xff] }
  0x61   : > { %1137 = vmatpush.bf16.msra.mxu2 %v2189_v32  ;;  %1223 = vmatpush.bf16.msra.mxu3 %v2198_v47  ;;  %v2219_v32 = vld [vmem:[#allocation16] sm:$0xff]  ;;  %v2228_v47 = vld [vmem:[#allocation18 + $0x8] sm:$0xff] }
  0x63   : > { %965 = vmatpush.bf16.msra.mxu0 %v2171_v11 }
  0x64   : > { %1052 = vmatpush.bf16.msra.mxu1 %v2179_v18  ;;  %v2225_v18 = vld [vmem:[#allocation16 + $0x30] sm:$0xff] }
  0x65   : > { %1138 = vmatpush.bf16.msra.mxu2 %v2188_v33  ;;  %1224 = vmatpush.bf16.msra.mxu3 %v2197_v48  ;;  %v2234_v33 = vld [vmem:[#allocation18 + $0x38] sm:$0xff]  ;;  %v2227_v48 = vld [vmem:[#allocation18] sm:$0xff] }
  0x66   : > { %966 = vmatmul.bf16.vlgmr.msra.gmra.mxu0 %v889_v14  ;;  %v2213_v14 = vld [vmem:[#allocation15 + $0x10] sm:$0xff] }
  0x67   : > { %1304 = vmatpush.bf16.msrb.mxu0 %v2210_v51 }
  0x68   : > { %1389 = vmatpush.bf16.msrb.mxu1 %v2218_v3 }
  0x69   : > { %1139 = vmatpush.bf16.msra.mxu2 %v2187_v34  ;;  %1225 = vmatpush.bf16.msra.mxu3 %v2196_v49  ;;  %v2233_v34 = vld [vmem:[#allocation18 + $0x30] sm:$0xff] }
  0x6b   : > { %1305 = vmatpush.bf16.msrb.mxu0 %v2209_v52 }
  0x6c   : > { %1390 = vmatpush.bf16.msrb.mxu1 %v2217_v4 }
  0x6d   : > { %1226 = vmatpush.bf16.msra.mxu3 %v2195_v50  ;;  %1474 = vmatpush.bf16.msrb.mxu2 %v2226_v17  ;;  %v2362_v50 = vld [vmem:[%s3058_s14] ss:$0 sm:$0xff] }
  0x6f   : > { %1306 = vmatpush.bf16.msrb.mxu0 %v2208_v53 }
  0x70   : > { %1391 = vmatpush.bf16.msrb.mxu1 %v2216_v5 }
  0x71   : > { %1475 = vmatpush.bf16.msrb.mxu2 %v2225_v18  ;;  %1559 = vmatpush.bf16.msrb.mxu3 %v2234_v33 }
  0x73   : > { %1307 = vmatpush.bf16.msrb.mxu0 %v2207_v54 }
  0x74   : > { %1392 = vmatpush.bf16.msrb.mxu1 %v2215_v6 }
  0x75   : > { %1476 = vmatpush.bf16.msrb.mxu2 %v2224_v19  ;;  %1560 = vmatpush.bf16.msrb.mxu3 %v2233_v34 }
  0x77   : > { %1308 = vmatpush.bf16.msrb.mxu0 %v2206_v56 }
  0x78   : > { %1393 = vmatpush.bf16.msrb.mxu1 %v2214_v13 }
  0x79   : > { %1477 = vmatpush.bf16.msrb.mxu2 %v2223_v20  ;;  %1561 = vmatpush.bf16.msrb.mxu3 %v2232_v35 }
  0x7b   : > { %1309 = vmatpush.bf16.msrb.mxu0 %v2205_v0 }
  0x7c   : > { %1394 = vmatpush.bf16.msrb.mxu1 %v2213_v14 }
  0x7d   : > { %1562 = vmatpush.bf16.msrb.mxu3 %v2231_v36 }
  0x7f   : > { %1310 = vmatpush.bf16.msrb.mxu0 %v2204_v1 }
  0x80   : > { %1395 = vmatpush.bf16.msrb.mxu1 %v2212_v15 }
  0x83   : > { %1311 = vmatpush.bf16.msrb.mxu0 %v2203_v2 }
  0x84   : > { %1396 = vmatpush.bf16.msrb.mxu1 %v2211_v16 }
  0xe3   : > { %v967_v24 = vpop.f32.mrf.mxu0 }
  0xe4   : > { %v968_v25 = vadd.f32 %v2356_v23, %v967_v24 }
  0xe6   : > { %v972_v26 = vmax.f32 %v968_v25, 0.0 }
  0xe8   : > { %974 = vst [vmem:[%s867_s4] sm:$0xff] %v972_v26 }
  0xeb   : > { %v969_v27 = vpop.f32.mrf.mxu0 }
  0xec   : > { %v970_v28 = vadd.f32 %v2356_v23, %v969_v27 }
  0xee   : > { %v973_v29 = vmax.f32 %v970_v28, 0.0 }
  0xf0   : > { %975 = vst [vmem:[%s867_s4 + $0x8] sm:$0xff] %v973_v29  ;;  %v976_v30 = vpack.c.bf16 %v973_v29, %v972_v26  ;;  %v2222_v29 = vld [vmem:[#allocation16 + $0x18] sm:$0xff] }
  0xf1   : > { %1478 = vmatpush.bf16.msrb.mxu2 %v2222_v29 }
  0xf2   : > { %1053 = vmatmul.bf16.vlgmr.msra.gmra.mxu1 %v976_v30  ;;  %v2221_v30 = vld [vmem:[#allocation16 + $0x10] sm:$0xff] }
  0xf5   : > { %1479 = vmatpush.bf16.msrb.mxu2 %v2221_v30 }
  0xf9   : > { %1480 = vmatpush.bf16.msrb.mxu2 %v2220_v31 }
  0xfd   : > { %1481 = vmatpush.bf16.msrb.mxu2 %v2219_v32 }
 0x16f   : > { %v1054_v40 = vpop.f32.mrf.mxu1 }
 0x170   : > { %v1055_v41 = vadd.f32 %v2357_v39, %v1054_v40 }
 0x172   : > { %v1059_v42 = vmax.f32 %v1055_v41, 0.0 }
 0x174   : > { %1061 = vst [vmem:[%s873_s1] sm:$0xff] %v1059_v42 }
 0x177   : > { %v1056_v43 = vpop.f32.mrf.mxu1 }
 0x178   : > { %v1057_v44 = vadd.f32 %v2357_v39, %v1056_v43 }
 0x17a   : > { %v1060_v45 = vmax.f32 %v1057_v44, 0.0 }
 0x17c   : > { %1062 = vst [vmem:[%s873_s1 + $0x8] sm:$0xff] %v1060_v45  ;;  %v1063_v46 = vpack.c.bf16 %v1060_v45, %v1059_v42  ;;  %v2230_v45 = vld [vmem:[#allocation18 + $0x18] sm:$0xff] }
 0x17d   : > { %1563 = vmatpush.bf16.msrb.mxu3 %v2230_v45 }
 0x17e   : > { %1140 = vmatmul.bf16.vlgmr.msra.gmra.mxu2 %v1063_v46  ;;  %v2229_v46 = vld [vmem:[#allocation18 + $0x10] sm:$0xff] }
 0x181   : > { %1564 = vmatpush.bf16.msrb.mxu3 %v2229_v46 }
 0x185   : > { %1565 = vmatpush.bf16.msrb.mxu3 %v2228_v47 }
 0x189   : > { %1566 = vmatpush.bf16.msrb.mxu3 %v2227_v48 }
 0x201   : > { %v1141_v57 = vpop.f32.mrf.mxu2 }
 0x202   : > { %v1142_v58 = vadd.f32 %v2358_v55, %v1141_v57 }
 0x204   : > { %v1146_v59 = vmax.f32 %v1142_v58, 0.0 }
 0x206   : > { %1148 = vst [vmem:[%s879_s8] sm:$0xff] %v1146_v59 }
 0x209   : > { %v1143_v60 = vpop.f32.mrf.mxu2 }
 0x20a   : > { %v1144_v61 = vadd.f32 %v2358_v55, %v1143_v60 }
 0x20c   : > { %v1147_v62 = vmax.f32 %v1144_v61, 0.0 }
 0x20e   : > { %1149 = vst [vmem:[%s879_s8 + $0x8] sm:$0xff] %v1147_v62  ;;  %v1150_v63 = vpack.c.bf16 %v1147_v62, %v1146_v59  ;;  %s3091_s8 = sld [smem:[#allocation34_spill]] }
 0x210   : > { %1227 = vmatmul.bf16.vlgmr.msra.gmra.mxu3 %v1150_v63 }
 0x214   : > { %v2363_v57 = vld [vmem:[%s3091_s8] ss:$0 sm:$0xff] }
 0x293   : > { %v1228_v8 = vpop.f32.mrf.mxu3 }
 0x294   : > { %v1229_v9 = vadd.f32 %v2359_v7, %v1228_v8 }
 0x296   : > { %1233 = vst [vmem:[%s885_s3] sm:$0xff] %v1229_v9 }
 0x29b   : > { %v1230_v10 = vpop.f32.mrf.mxu3 }
 0x29c   : > { %v1231_v11 = vadd.f32 %v2359_v7, %v1230_v10 }
 0x29e   : > { %1234 = vst [vmem:[%s885_s3 + $0x8] sm:$0xff] %v1231_v11  ;;  %v1235_v12 = vpack.c.bf16 %v1231_v11, %v1229_v9 }
 0x2a0   : > { %1312 = vmatmul.bf16.vlgmr.msrb.gmra.mxu0 %v1235_v12 }
 0x31d   : > { %v1313_v21 = vpop.f32.mrf.mxu0 }
 0x31e   : > { %v1314_v23 = vadd.f32 %v2360_v22, %v1313_v21 }
 0x320   : > { %v1318_v26 = vmax.f32 %v1314_v23, 0.0 }
 0x325   : > { %v1315_v24 = vpop.f32.mrf.mxu0 }
 0x326   : > { %v1316_v25 = vadd.f32 %v2360_v22, %v1315_v24 }
 0x328   : > { %v1319_v27 = vmax.f32 %v1316_v25, 0.0 }
 0x32a   : > { %v1320_v28 = vpack.c.bf16 %v1319_v27, %v1318_v26 }
 0x32c   : > { %1397 = vmatmul.bf16.vlgmr.msrb.gmra.mxu1 %v1320_v28 }
 0x3a9   : > { %v1398_v37 = vpop.f32.mrf.mxu1 }
 0x3aa   : > { %v1399_v39 = vadd.f32 %v2361_v38, %v1398_v37 }
 0x3ac   : > { %v1403_v42 = vmax.f32 %v1399_v39, 0.0 }
 0x3b1   : > { %v1400_v40 = vpop.f32.mrf.mxu1 }
 0x3b2   : > { %v1401_v41 = vadd.f32 %v2361_v38, %v1400_v40 }
 0x3b4   : > { %v1404_v43 = vmax.f32 %v1401_v41, 0.0 }
 0x3b6   : > { %v1405_v44 = vpack.c.bf16 %v1404_v43, %v1403_v42 }
 0x3b8   : > { %1482 = vmatmul.bf16.vlgmr.msrb.gmra.mxu2 %v1405_v44 }
 0x43b   : > { %v1483_v49 = vpop.f32.mrf.mxu2 }
 0x43c   : > { %v1484_v51 = vadd.f32 %v2362_v50, %v1483_v49 }
 0x43e   : > { %v1488_v54 = vmax.f32 %v1484_v51, 0.0 }
 0x443   : > { %v1485_v52 = vpop.f32.mrf.mxu2 }
 0x444   : > { %v1486_v53 = vadd.f32 %v2362_v50, %v1485_v52 }
 0x446   : > { %v1489_v55 = vmax.f32 %v1486_v53, 0.0 }
 0x448   : > { %v1490_v56 = vpack.c.bf16 %v1489_v55, %v1488_v54 }
 0x44a   : > { %1567 = vmatmul.bf16.vlgmr.msrb.gmra.mxu3 %v1490_v56 }
 0x4cd   : > { %v1568_v58 = vpop.f32.mrf.mxu3 }
 0x4ce   : > { %v1569_v59 = vadd.f32 %v2363_v57, %v1568_v58 }
 0x4d0   : > { %1573 = vst [vmem:[%s861_s25] sm:$0xff] %v1569_v59 }
 0x4d5   : > { %v1570_v60 = vpop.f32.mrf.mxu3 }
 0x4d6   : > { %v1571_v61 = vadd.f32 %v2363_v57, %v1570_v60 }
 0x4d8   : > { %1574 = vst [vmem:[%s861_s25 + $0x8] sm:$0xff] %v1571_v61 }
 0x4d9 PF: > { %s38_s2 = sadd.s32 1, %s2724_s2  }
 0x4da   : > { %p35_p7 = scmp.ge.s32.totalorder %s38_s2, 4  }
 0x4dc   :  { %37 = sbr.rel (!%p35_p7) target bundleno = 18 (0x12), region = 211 }
 0x4e1   :  { %1665 = vsyncpa [#allocation3], 1 }
 0x4e2   :  { %1667 = vsyncpa [#allocation3 + $0x1], 1 }
 0x4e3   :  { %1668 = vsyncpa [#allocation5], 1 }
 0x4e4   :  { %1669 = vsyncpa [#allocation8], 1 }
 0x4e5   :  { %1670 = vsyncpa [#allocation11], 1 }
 0x4e6   :  { %1671 = vsyncpa [#allocation14], 1 }
 0x4e7   :  { %1672 = vsyncpa [#allocation17], 1 }

</bundles_post_ra>
